<compile_context>
chip_gen: v7x
topology: tpu7x:2x2x1
jax: 0.10.0
libtpu: 0.0.40
codegen_flags: <defaults>
</compile_context>

<pallas_src>
import functools

import jax
import jax.numpy as jnp
import numpy as np
from jax.experimental import pallas as pl
from jax.experimental.pallas import tpu as pltpu

MASK_TOKEN_ID = 3  # synthetic tokenizer.mask_token_id


def _topk_by_lane(values, indices, k):
    """Iterative top-k along lanes with explicit index carry.

    values : [m, W] f32.   indices : [m, W] i32, or None (=> index == lane).
    Returns ([m, k] values desc, [m, k] i32 indices).  Ties resolve to the
    lowest lane which, given index-ascending lane order among equal values,
    matches jax.lax.top_k / torch.topk tie-breaking.
    """
    m_rows, W = values.shape
    lane = jax.lax.broadcasted_iota(jnp.int32, (m_rows, W), 1)
    col = jax.lax.broadcasted_iota(jnp.int32, (m_rows, k), 1)
    out_v = jnp.zeros((m_rows, k), jnp.float32)
    out_i = jnp.zeros((m_rows, k), jnp.int32)
    work = values
    for t in range(k):
        mx = jnp.max(work, axis=-1, keepdims=True)                     # XLU
        first = jnp.min(jnp.where(work == mx, lane, W),
                        axis=-1, keepdims=True)                        # lowest tying lane
        sel = lane == first                                            # one-hot
        if indices is None:
            idx_t = first
        else:
            idx_t = jnp.sum(jnp.where(sel, indices, 0), axis=-1, keepdims=True)
        out_v = jnp.where(col == t, mx, out_v)
        out_i = jnp.where(col == t, idx_t, out_i)
        work = jnp.where(sel, float("-inf"), work)   # index-based knockout
    return out_v, out_i


def bert_topk_kernel(x_ref, wv_ref, bv_ref, wout_t_ref, bout_ref,
                     probs_ref, idx_ref, vals_sc, idx_sc, *, topk):
    # x_ref:      (tm, H)  f32  VMEM   (masked rows only)
    # wv_ref:     (H, tv)  bf16 VMEM   (streamed vocab tile of the MLM head)
    # bv_ref:     (1, tv)  f32  VMEM
    # wout_t_ref: (k, k)   f32  VMEM   (= W_out^T)      bout_ref: (1, k) f32
    # probs_ref:  (tm, k)  f32         idx_ref: (tm, k) i32   (sparse outputs)
    # vals_sc/idx_sc: (tm, k) running top-k carried across vocab tiles.
    v = pl.program_id(1)
    nv = pl.num_programs(1)
    tm = x_ref.shape[0]
    tv = wv_ref.shape[1]

    @pl.when(v == 0)
    def _():
        vals_sc[...] = jnp.full((tm, topk), float("-inf"), jnp.float32)
        idx_sc[...] = jnp.zeros((tm, topk), jnp.int32)

    # MLM head, this vocab tile: bf16 MXU matmul, f32 accumulation; bias folded
    # into the per-tile logits.
    logits = jnp.dot(x_ref[...].astype(jnp.bfloat16), wv_ref[...],
                     preferred_element_type=jnp.float32) + bv_ref[...]   # [tm, tv]

    # Per-tile partial top-k (XLU reduces only over tv lanes)...
    tile_v, tile_lane = _topk_by_lane(logits, None, topk)
    tile_i = tile_lane + v * tv                                          # global vocab idx

    # ...merged with the running [tm, k] carry (reduces over 2k lanes).
    cand_v = jnp.concatenate([vals_sc[...], tile_v], axis=-1)            # [tm, 2k]
    cand_i = jnp.concatenate([idx_sc[...], tile_i], axis=-1)
    new_v, new_i = _topk_by_lane(cand_v, cand_i, topk)
    vals_sc[...] = new_v
    idx_sc[...] = new_i

    @pl.when(v == nv - 1)
    def _():
        # self.out: Linear(k, k) as a VPU broadcast-MAC (k=8 -> MXU would idle).
        w_t = wout_t_ref[...]                                            # (k, k) = W^T
        ov = jnp.zeros((tm, topk), jnp.float32) + bout_ref[...]
        for t in range(topk):
            ov = ov + new_v[:, t:t + 1] * w_t[t:t + 1, :]
        # softmax over the k outputs; reciprocal goes to the EUP slot.
        mx = jnp.max(ov, axis=-1, keepdims=True)
        ex = jnp.exp(ov - mx)
        soft = ex * pl.reciprocal(jnp.sum(ex, axis=-1, keepdims=True), approx=True)
        probs_ref[...] = soft
        idx_ref[...] = new_i


def custom_bert_forward(input_ids, params, topk, *, tm=8, tv=128):
    emb = params["emb"]            # [V, H]
    pos_emb = params["pos_emb"]    # [S, H]
    wv = params["w_vocab"]         # [H, V]
    bv = params["b_vocab"]         # [V]
    w_out = params["w_out"]        # [k, k]  (all ones, per nn.init.ones_)
    b_out = params["b_out"]        # [k]

    B, S = input_ids.shape
    V, H = emb.shape
    assert V % tv == 0

    # ---- [MASK]-row gather (glue): compute only on masked rows --------------
    ids_np = np.asarray(input_ids).reshape(-1)
    rows = np.nonzero(ids_np == MASK_TOKEN_ID)[0].astype(np.int32)
    n_mask = int(rows.shape[0])
    n_pad = max(tm, -(-max(n_mask, 1) // tm) * tm)     # pad row count to tm
    rows_pad = np.zeros((n_pad,), np.int32)
    rows_pad[:n_mask] = rows

    # TODO(synk): at real H/S fold this tiny gather into the kernel via
    # scalar-prefetched row ids + per-row DMA gather to skip the HBM round-trip.
    tok = jnp.asarray(ids_np[rows_pad])
    pos = jnp.asarray((rows_pad % S).astype(np.int32))
    x = (emb[tok] + pos_emb[pos]).astype(jnp.float32)                   # [n_pad, H]

    kernel = functools.partial(bert_topk_kernel, topk=topk)
    probs, idxs = pl.pallas_call(
        kernel,
        out_shape=(jax.ShapeDtypeStruct((n_pad, topk), jnp.float32),
                   jax.ShapeDtypeStruct((n_pad, topk), jnp.int32)),
        grid=(n_pad // tm, V // tv),
        in_specs=[
            pl.BlockSpec((tm, H), lambda r, v: (r, 0)),            # x rows
            pl.BlockSpec((H, tv), lambda r, v: (0, v)),            # W_vocab tile (bf16)
            pl.BlockSpec((1, tv), lambda r, v: (0, v)),            # b_vocab tile
            pl.BlockSpec((topk, topk), lambda r, v: (0, 0)),       # W_out^T
            pl.BlockSpec((1, topk), lambda r, v: (0, 0)),          # b_out
        ],
        out_specs=(
            pl.BlockSpec((tm, topk), lambda r, v: (r, 0)),
            pl.BlockSpec((tm, topk), lambda r, v: (r, 0)),
        ),
        scratch_shapes=[pltpu.VMEM((tm, topk), jnp.float32),
                        pltpu.VMEM((tm, topk), jnp.int32)],
        compiler_params=pltpu.CompilerParams(
            dimension_semantics=("parallel", "arbitrary"),
            vmem_limit_bytes=32 * 1024 * 1024),
    )(x,
      wv.astype(jnp.bfloat16),
      bv.reshape(1, V).astype(jnp.float32),
      w_out.T.astype(jnp.float32),
      b_out.reshape(1, topk).astype(jnp.float32))

    # ---- sparse -> dense scatter into the zeros_like(output) result --------
    out = jnp.zeros((B * S, V), jnp.float32)
    if n_mask > 0:
        r = jnp.asarray(rows)
        out = out.at[r[:, None], idxs[:n_mask]].set(probs[:n_mask])
    return out.reshape(B, S, V)


def reference(input_ids, params, topk):
    """Pure-JAX reference with identical semantics (bf16 MXU inputs, f32 acc)."""
    emb, pos_emb = params["emb"], params["pos_emb"]
    wv, bv = params["w_vocab"], params["b_vocab"]
    w_out, b_out = params["w_out"], params["b_out"]
    B, S = input_ids.shape
    V = emb.shape[0]
    x = emb[input_ids] + pos_emb[None, :, :]
    logits = jnp.einsum("bsh,hv->bsv",
                        x.astype(jnp.bfloat16), wv.astype(jnp.bfloat16),
                        preferred_element_type=jnp.float32) + bv
    vals, idxs = jax.lax.top_k(logits, topk)                     # [B, S, k]
    ov = jnp.einsum("bsk,jk->bsj", vals, w_out) + b_out          # Linear(k, k)
    lo = jax.nn.softmax(ov, axis=-1)
    onehot = jax.nn.one_hot(idxs, V, dtype=jnp.float32)          # [B, S, k, V]
    scatter = jnp.einsum("bskv,bsk->bsv", onehot, lo)
    mask = (input_ids == MASK_TOKEN_ID)[..., None]
    return jnp.where(mask, scatter, 0.0)


if __name__ == "__main__":
    B, S, H, V, K = 2, 8, 32, 256, 8   # batch, seq, hidden, vocab, topk
    TM, TV = 8, 128                    # row tile, vocab tile (toy sizes)

    key = jax.random.PRNGKey(0)
    k1, k2, k3, k4, k5, k6 = jax.random.split(key, 6)

    emb = jax.random.normal(k1, (V, H), jnp.float32) * 0.5
    pos_emb = jax.random.normal(k6, (S, H), jnp.float32) * 0.1
    w_vocab = jax.random.normal(k2, (H, V), jnp.float32) * 0.2
    b_vocab = jax.random.normal(k3, (V,), jnp.float32) * 0.1
    w_out = jnp.ones((K, K), jnp.float32)                        # nn.init.ones_
    b_out = jax.random.uniform(k4, (K,), jnp.float32, -0.3, 0.3)

    # tokens in [4, V) so only explicitly planted [MASK] positions exist
    input_ids = jax.random.randint(k5, (B, S), 4, V, jnp.int32)
    for (bi, si) in [(0, 1), (1, 1), (0, 2), (1, 2), (0, 4), (1, 4),
                     (0, 5), (1, 6), (0, 7)]:                    # 9 masked rows
        input_ids = input_ids.at[bi, si].set(MASK_TOKEN_ID)

    params = dict(emb=emb, pos_emb=pos_emb, w_vocab=w_vocab, b_vocab=b_vocab,
                  w_out=w_out, b_out=b_out)

    out = custom_bert_forward(input_ids, params, K, tm=TM, tv=TV)
    out = jax.block_until_ready(out)

    ref = reference(input_ids, params, K)
    np.testing.assert_allclose(np.asarray(out), np.asarray(ref),
                               atol=2e-2, rtol=2e-2)

    print("KERNEL_OK")
</pallas_src>

<mosaic_0001>
module attributes {stable_mosaic.version = 11 : i64} {
  func.func @bert_topk_kernel(%arg0: i32, %arg1: i32, %arg2: memref<8x32xf32, #tpu.memory_space<vmem>>, %arg3: memref<32x128xbf16, #tpu.memory_space<vmem>>, %arg4: memref<1x128xf32, #tpu.memory_space<vmem>>, %arg5: memref<8x8xf32, #tpu.memory_space<vmem>>, %arg6: memref<1x8xf32, #tpu.memory_space<vmem>>, %arg7: memref<8x8xf32, #tpu.memory_space<vmem>>, %arg8: memref<8x8xi32, #tpu.memory_space<vmem>>, %arg9: memref<8x8xf32, #tpu.memory_space<vmem>>, %arg10: memref<8x8xi32, #tpu.memory_space<vmem>>) attributes {dimension_semantics = [#tpu.dimension_semantics<parallel>, #tpu.dimension_semantics<arbitrary>], iteration_bounds = array<i64: 2, 2>, scalar_prefetch = 0 : i64, scratch_operands = 2 : i64, tpu.core_type = #tpu.core_type<tc>, window_params = [{transform_indices = @transform_0, window_bounds = array<i64: 8, 32>}, {transform_indices = @transform_1, window_bounds = array<i64: 32, 128>}, {transform_indices = @transform_2, window_bounds = array<i64: 1, 128>}, {pipeline_mode = #tpu.pipeline_mode<synchronous>, transform_indices = @transform_3, window_bounds = array<i64: 8, 8>}, {pipeline_mode = #tpu.pipeline_mode<synchronous>, transform_indices = @transform_4, window_bounds = array<i64: 1, 8>}, {transform_indices = @transform_5, window_bounds = array<i64: 8, 8>}, {transform_indices = @transform_6, window_bounds = array<i64: 8, 8>}]} {
    %c0_i32 = arith.constant 0 : i32
    %0 = arith.cmpi eq, %arg1, %c0_i32 : i32
    %1 = arith.extui %0 : i1 to i32
    %c0_i32_0 = arith.constant 0 : i32
    %2 = arith.cmpi ne, %1, %c0_i32_0 : i32
    scf.if %2 {
      %cst_122 = arith.constant 0xFF800000 : f32
      %408 = vector.broadcast %cst_122 : f32 to vector<8x8xf32>
      %c0_123 = arith.constant 0 : index
      %c0_124 = arith.constant 0 : index
      %409 = vector.load %arg9[%c0_123, %c0_124] : memref<8x8xf32, #tpu.memory_space<vmem>>, vector<8x8xf32>
      tpu.vector_store %arg9[%c0_123, %c0_124], %408 {strides = array<i32>} : memref<8x8xf32, #tpu.memory_space<vmem>>, vector<8x8xf32>,
      %c0_i32_125 = arith.constant 0 : i32
      %410 = vector.broadcast %c0_i32_125 : i32 to vector<8x8xi32>
      %c0_126 = arith.constant 0 : index
      %c0_127 = arith.constant 0 : index
      %411 = vector.load %arg10[%c0_126, %c0_127] : memref<8x8xi32, #tpu.memory_space<vmem>>, vector<8x8xi32>
      tpu.vector_store %arg10[%c0_126, %c0_127], %410 {strides = array<i32>} : memref<8x8xi32, #tpu.memory_space<vmem>>, vector<8x8xi32>,
    } else {
    }
    %c0 = arith.constant 0 : index
    %c0_1 = arith.constant 0 : index
    %3 = vector.load %arg2[%c0, %c0_1] : memref<8x32xf32, #tpu.memory_space<vmem>>, vector<8x32xf32>
    %4 = arith.truncf %3 : vector<8x32xf32> to vector<8x32xbf16>
    %c0_2 = arith.constant 0 : index
    %c0_3 = arith.constant 0 : index
    %5 = vector.load %arg3[%c0_2, %c0_3] : memref<32x128xbf16, #tpu.memory_space<vmem>>, vector<32x128xbf16>
    %cst = arith.constant dense<0.000000e+00> : vector<8x128xf32>
    %6 = tpu.matmul %4, %5, %cst {dimension_numbers = #tpu.dot_dimension_numbers<[1], [0], [0], [1], [0, 0, 1, 1], [], []>} : vector<8x32xbf16>, vector<32x128xbf16>, vector<8x128xf32> -> vector<8x128xf32>
    %c0_4 = arith.constant 0 : index
    %c0_5 = arith.constant 0 : index
    %7 = vector.load %arg4[%c0_4, %c0_5] : memref<1x128xf32, #tpu.memory_space<vmem>>, vector<1x128xf32>
    %8 = vector.broadcast %7 : vector<1x128xf32> to vector<8x128xf32>
    %9 = arith.addf %6, %8 : vector<8x128xf32>
    %10 = tpu.iota {dimensions = array<i32: 1>} : vector<8x128xi32>
    %11 = tpu.iota {dimensions = array<i32: 1>} : vector<8x8xi32>
    %cst_6 = arith.constant 0.000000e+00 : f32
    %12 = vector.broadcast %cst_6 : f32 to vector<8x8xf32>
    %c0_i32_7 = arith.constant 0 : i32
    %13 = vector.broadcast %c0_i32_7 : i32 to vector<8x8xi32>
    %cst_8 = arith.constant dense<0xFF800000> : vector<8xf32>
    %14 = vector.multi_reduction <maximumf>, %9, %cst_8 [1] : vector<8x128xf32> to vector<8xf32>
    %15 = vector.shape_cast %14 : vector<8xf32> to vector<8x1xf32>
    %16 = vector.broadcast %15 : vector<8x1xf32> to vector<8x128xf32>
    %17 = arith.cmpf oeq, %9, %16 : vector<8x128xf32>
    %c128_i32 = arith.constant 128 : i32
    %18 = vector.broadcast %c128_i32 : i32 to vector<8x128xi32>
    %19 = arith.select %17, %10, %18 : vector<8x128xi1>, vector<8x128xi32>
    %cst_9 = arith.constant dense<2147483647> : vector<8xi32>
    %20 = vector.multi_reduction <minsi>, %19, %cst_9 [1] : vector<8x128xi32> to vector<8xi32>
    %21 = vector.shape_cast %20 : vector<8xi32> to vector<8x1xi32>
    %22 = vector.broadcast %21 : vector<8x1xi32> to vector<8x128xi32>
    %23 = arith.cmpi eq, %10, %22 : vector<8x128xi32>
    %c0_i32_10 = arith.constant 0 : i32
    %24 = vector.broadcast %c0_i32_10 : i32 to vector<8x8xi32>
    %25 = arith.cmpi eq, %11, %24 : vector<8x8xi32>
    %26 = vector.shape_cast %15 : vector<8x1xf32> to vector<8x1xf32>
    %27 = vector.broadcast %26 : vector<8x1xf32> to vector<8x8xf32>
    %28 = arith.select %25, %27, %12 : vector<8x8xi1>, vector<8x8xf32>
    %c0_i32_11 = arith.constant 0 : i32
    %29 = vector.broadcast %c0_i32_11 : i32 to vector<8x8xi32>
    %30 = arith.cmpi eq, %11, %29 : vector<8x8xi32>
    %31 = vector.shape_cast %21 : vector<8x1xi32> to vector<8x1xi32>
    %32 = vector.broadcast %31 : vector<8x1xi32> to vector<8x8xi32>
    %33 = arith.select %30, %32, %13 : vector<8x8xi1>, vector<8x8xi32>
    %cst_12 = arith.constant 0xFF800000 : f32
    %34 = vector.broadcast %cst_12 : f32 to vector<8x128xf32>
    %35 = arith.select %23, %34, %9 : vector<8x128xi1>, vector<8x128xf32>
    %cst_13 = arith.constant dense<0xFF800000> : vector<8xf32>
    %36 = vector.multi_reduction <maximumf>, %35, %cst_13 [1] : vector<8x128xf32> to vector<8xf32>
    %37 = vector.shape_cast %36 : vector<8xf32> to vector<8x1xf32>
    %38 = vector.broadcast %37 : vector<8x1xf32> to vector<8x128xf32>
    %39 = arith.cmpf oeq, %35, %38 : vector<8x128xf32>
    %c128_i32_14 = arith.constant 128 : i32
    %40 = vector.broadcast %c128_i32_14 : i32 to vector<8x128xi32>
    %41 = arith.select %39, %10, %40 : vector<8x128xi1>, vector<8x128xi32>
    %cst_15 = arith.constant dense<2147483647> : vector<8xi32>
    %42 = vector.multi_reduction <minsi>, %41, %cst_15 [1] : vector<8x128xi32> to vector<8xi32>
    %43 = vector.shape_cast %42 : vector<8xi32> to vector<8x1xi32>
    %44 = vector.broadcast %43 : vector<8x1xi32> to vector<8x128xi32>
    %45 = arith.cmpi eq, %10, %44 : vector<8x128xi32>
    %c1_i32 = arith.constant 1 : i32
    %46 = vector.broadcast %c1_i32 : i32 to vector<8x8xi32>
    %47 = arith.cmpi eq, %11, %46 : vector<8x8xi32>
    %48 = vector.shape_cast %37 : vector<8x1xf32> to vector<8x1xf32>
    %49 = vector.broadcast %48 : vector<8x1xf32> to vector<8x8xf32>
    %50 = arith.select %47, %49, %28 : vector<8x8xi1>, vector<8x8xf32>
    %c1_i32_16 = arith.constant 1 : i32
    %51 = vector.broadcast %c1_i32_16 : i32 to vector<8x8xi32>
    %52 = arith.cmpi eq, %11, %51 : vector<8x8xi32>
    %53 = vector.shape_cast %43 : vector<8x1xi32> to vector<8x1xi32>
    %54 = vector.broadcast %53 : vector<8x1xi32> to vector<8x8xi32>
    %55 = arith.select %52, %54, %33 : vector<8x8xi1>, vector<8x8xi32>
    %cst_17 = arith.constant 0xFF800000 : f32
    %56 = vector.broadcast %cst_17 : f32 to vector<8x128xf32>
    %57 = arith.select %45, %56, %35 : vector<8x128xi1>, vector<8x128xf32>
    %cst_18 = arith.constant dense<0xFF800000> : vector<8xf32>
    %58 = vector.multi_reduction <maximumf>, %57, %cst_18 [1] : vector<8x128xf32> to vector<8xf32>
    %59 = vector.shape_cast %58 : vector<8xf32> to vector<8x1xf32>
    %60 = vector.broadcast %59 : vector<8x1xf32> to vector<8x128xf32>
    %61 = arith.cmpf oeq, %57, %60 : vector<8x128xf32>
    %c128_i32_19 = arith.constant 128 : i32
    %62 = vector.broadcast %c128_i32_19 : i32 to vector<8x128xi32>
    %63 = arith.select %61, %10, %62 : vector<8x128xi1>, vector<8x128xi32>
    %cst_20 = arith.constant dense<2147483647> : vector<8xi32>
    %64 = vector.multi_reduction <minsi>, %63, %cst_20 [1] : vector<8x128xi32> to vector<8xi32>
    %65 = vector.shape_cast %64 : vector<8xi32> to vector<8x1xi32>
    %66 = vector.broadcast %65 : vector<8x1xi32> to vector<8x128xi32>
    %67 = arith.cmpi eq, %10, %66 : vector<8x128xi32>
    %c2_i32 = arith.constant 2 : i32
    %68 = vector.broadcast %c2_i32 : i32 to vector<8x8xi32>
    %69 = arith.cmpi eq, %11, %68 : vector<8x8xi32>
    %70 = vector.shape_cast %59 : vector<8x1xf32> to vector<8x1xf32>
    %71 = vector.broadcast %70 : vector<8x1xf32> to vector<8x8xf32>
    %72 = arith.select %69, %71, %50 : vector<8x8xi1>, vector<8x8xf32>
    %c2_i32_21 = arith.constant 2 : i32
    %73 = vector.broadcast %c2_i32_21 : i32 to vector<8x8xi32>
    %74 = arith.cmpi eq, %11, %73 : vector<8x8xi32>
    %75 = vector.shape_cast %65 : vector<8x1xi32> to vector<8x1xi32>
    %76 = vector.broadcast %75 : vector<8x1xi32> to vector<8x8xi32>
    %77 = arith.select %74, %76, %55 : vector<8x8xi1>, vector<8x8xi32>
    %cst_22 = arith.constant 0xFF800000 : f32
    %78 = vector.broadcast %cst_22 : f32 to vector<8x128xf32>
    %79 = arith.select %67, %78, %57 : vector<8x128xi1>, vector<8x128xf32>
    %cst_23 = arith.constant dense<0xFF800000> : vector<8xf32>
    %80 = vector.multi_reduction <maximumf>, %79, %cst_23 [1] : vector<8x128xf32> to vector<8xf32>
    %81 = vector.shape_cast %80 : vector<8xf32> to vector<8x1xf32>
    %82 = vector.broadcast %81 : vector<8x1xf32> to vector<8x128xf32>
    %83 = arith.cmpf oeq, %79, %82 : vector<8x128xf32>
    %c128_i32_24 = arith.constant 128 : i32
    %84 = vector.broadcast %c128_i32_24 : i32 to vector<8x128xi32>
    %85 = arith.select %83, %10, %84 : vector<8x128xi1>, vector<8x128xi32>
    %cst_25 = arith.constant dense<2147483647> : vector<8xi32>
    %86 = vector.multi_reduction <minsi>, %85, %cst_25 [1] : vector<8x128xi32> to vector<8xi32>
    %87 = vector.shape_cast %86 : vector<8xi32> to vector<8x1xi32>
    %88 = vector.broadcast %87 : vector<8x1xi32> to vector<8x128xi32>
    %89 = arith.cmpi eq, %10, %88 : vector<8x128xi32>
    %c3_i32 = arith.constant 3 : i32
    %90 = vector.broadcast %c3_i32 : i32 to vector<8x8xi32>
    %91 = arith.cmpi eq, %11, %90 : vector<8x8xi32>
    %92 = vector.shape_cast %81 : vector<8x1xf32> to vector<8x1xf32>
    %93 = vector.broadcast %92 : vector<8x1xf32> to vector<8x8xf32>
    %94 = arith.select %91, %93, %72 : vector<8x8xi1>, vector<8x8xf32>
    %c3_i32_26 = arith.constant 3 : i32
    %95 = vector.broadcast %c3_i32_26 : i32 to vector<8x8xi32>
    %96 = arith.cmpi eq, %11, %95 : vector<8x8xi32>
    %97 = vector.shape_cast %87 : vector<8x1xi32> to vector<8x1xi32>
    %98 = vector.broadcast %97 : vector<8x1xi32> to vector<8x8xi32>
    %99 = arith.select %96, %98, %77 : vector<8x8xi1>, vector<8x8xi32>
    %cst_27 = arith.constant 0xFF800000 : f32
    %100 = vector.broadcast %cst_27 : f32 to vector<8x128xf32>
    %101 = arith.select %89, %100, %79 : vector<8x128xi1>, vector<8x128xf32>
    %cst_28 = arith.constant dense<0xFF800000> : vector<8xf32>
    %102 = vector.multi_reduction <maximumf>, %101, %cst_28 [1] : vector<8x128xf32> to vector<8xf32>
    %103 = vector.shape_cast %102 : vector<8xf32> to vector<8x1xf32>
    %104 = vector.broadcast %103 : vector<8x1xf32> to vector<8x128xf32>
    %105 = arith.cmpf oeq, %101, %104 : vector<8x128xf32>
    %c128_i32_29 = arith.constant 128 : i32
    %106 = vector.broadcast %c128_i32_29 : i32 to vector<8x128xi32>
    %107 = arith.select %105, %10, %106 : vector<8x128xi1>, vector<8x128xi32>
    %cst_30 = arith.constant dense<2147483647> : vector<8xi32>
    %108 = vector.multi_reduction <minsi>, %107, %cst_30 [1] : vector<8x128xi32> to vector<8xi32>
    %109 = vector.shape_cast %108 : vector<8xi32> to vector<8x1xi32>
    %110 = vector.broadcast %109 : vector<8x1xi32> to vector<8x128xi32>
    %111 = arith.cmpi eq, %10, %110 : vector<8x128xi32>
    %c4_i32 = arith.constant 4 : i32
    %112 = vector.broadcast %c4_i32 : i32 to vector<8x8xi32>
    %113 = arith.cmpi eq, %11, %112 : vector<8x8xi32>
    %114 = vector.shape_cast %103 : vector<8x1xf32> to vector<8x1xf32>
    %115 = vector.broadcast %114 : vector<8x1xf32> to vector<8x8xf32>
    %116 = arith.select %113, %115, %94 : vector<8x8xi1>, vector<8x8xf32>
    %c4_i32_31 = arith.constant 4 : i32
    %117 = vector.broadcast %c4_i32_31 : i32 to vector<8x8xi32>
    %118 = arith.cmpi eq, %11, %117 : vector<8x8xi32>
    %119 = vector.shape_cast %109 : vector<8x1xi32> to vector<8x1xi32>
    %120 = vector.broadcast %119 : vector<8x1xi32> to vector<8x8xi32>
    %121 = arith.select %118, %120, %99 : vector<8x8xi1>, vector<8x8xi32>
    %cst_32 = arith.constant 0xFF800000 : f32
    %122 = vector.broadcast %cst_32 : f32 to vector<8x128xf32>
    %123 = arith.select %111, %122, %101 : vector<8x128xi1>, vector<8x128xf32>
    %cst_33 = arith.constant dense<0xFF800000> : vector<8xf32>
    %124 = vector.multi_reduction <maximumf>, %123, %cst_33 [1] : vector<8x128xf32> to vector<8xf32>
    %125 = vector.shape_cast %124 : vector<8xf32> to vector<8x1xf32>
    %126 = vector.broadcast %125 : vector<8x1xf32> to vector<8x128xf32>
    %127 = arith.cmpf oeq, %123, %126 : vector<8x128xf32>
    %c128_i32_34 = arith.constant 128 : i32
    %128 = vector.broadcast %c128_i32_34 : i32 to vector<8x128xi32>
    %129 = arith.select %127, %10, %128 : vector<8x128xi1>, vector<8x128xi32>
    %cst_35 = arith.constant dense<2147483647> : vector<8xi32>
    %130 = vector.multi_reduction <minsi>, %129, %cst_35 [1] : vector<8x128xi32> to vector<8xi32>
    %131 = vector.shape_cast %130 : vector<8xi32> to vector<8x1xi32>
    %132 = vector.broadcast %131 : vector<8x1xi32> to vector<8x128xi32>
    %133 = arith.cmpi eq, %10, %132 : vector<8x128xi32>
    %c5_i32 = arith.constant 5 : i32
    %134 = vector.broadcast %c5_i32 : i32 to vector<8x8xi32>
    %135 = arith.cmpi eq, %11, %134 : vector<8x8xi32>
    %136 = vector.shape_cast %125 : vector<8x1xf32> to vector<8x1xf32>
    %137 = vector.broadcast %136 : vector<8x1xf32> to vector<8x8xf32>
    %138 = arith.select %135, %137, %116 : vector<8x8xi1>, vector<8x8xf32>
    %c5_i32_36 = arith.constant 5 : i32
    %139 = vector.broadcast %c5_i32_36 : i32 to vector<8x8xi32>
    %140 = arith.cmpi eq, %11, %139 : vector<8x8xi32>
    %141 = vector.shape_cast %131 : vector<8x1xi32> to vector<8x1xi32>
    %142 = vector.broadcast %141 : vector<8x1xi32> to vector<8x8xi32>
    %143 = arith.select %140, %142, %121 : vector<8x8xi1>, vector<8x8xi32>
    %cst_37 = arith.constant 0xFF800000 : f32
    %144 = vector.broadcast %cst_37 : f32 to vector<8x128xf32>
    %145 = arith.select %133, %144, %123 : vector<8x128xi1>, vector<8x128xf32>
    %cst_38 = arith.constant dense<0xFF800000> : vector<8xf32>
    %146 = vector.multi_reduction <maximumf>, %145, %cst_38 [1] : vector<8x128xf32> to vector<8xf32>
    %147 = vector.shape_cast %146 : vector<8xf32> to vector<8x1xf32>
    %148 = vector.broadcast %147 : vector<8x1xf32> to vector<8x128xf32>
    %149 = arith.cmpf oeq, %145, %148 : vector<8x128xf32>
    %c128_i32_39 = arith.constant 128 : i32
    %150 = vector.broadcast %c128_i32_39 : i32 to vector<8x128xi32>
    %151 = arith.select %149, %10, %150 : vector<8x128xi1>, vector<8x128xi32>
    %cst_40 = arith.constant dense<2147483647> : vector<8xi32>
    %152 = vector.multi_reduction <minsi>, %151, %cst_40 [1] : vector<8x128xi32> to vector<8xi32>
    %153 = vector.shape_cast %152 : vector<8xi32> to vector<8x1xi32>
    %154 = vector.broadcast %153 : vector<8x1xi32> to vector<8x128xi32>
    %155 = arith.cmpi eq, %10, %154 : vector<8x128xi32>
    %c6_i32 = arith.constant 6 : i32
    %156 = vector.broadcast %c6_i32 : i32 to vector<8x8xi32>
    %157 = arith.cmpi eq, %11, %156 : vector<8x8xi32>
    %158 = vector.shape_cast %147 : vector<8x1xf32> to vector<8x1xf32>
    %159 = vector.broadcast %158 : vector<8x1xf32> to vector<8x8xf32>
    %160 = arith.select %157, %159, %138 : vector<8x8xi1>, vector<8x8xf32>
    %c6_i32_41 = arith.constant 6 : i32
    %161 = vector.broadcast %c6_i32_41 : i32 to vector<8x8xi32>
    %162 = arith.cmpi eq, %11, %161 : vector<8x8xi32>
    %163 = vector.shape_cast %153 : vector<8x1xi32> to vector<8x1xi32>
    %164 = vector.broadcast %163 : vector<8x1xi32> to vector<8x8xi32>
    %165 = arith.select %162, %164, %143 : vector<8x8xi1>, vector<8x8xi32>
    %cst_42 = arith.constant 0xFF800000 : f32
    %166 = vector.broadcast %cst_42 : f32 to vector<8x128xf32>
    %167 = arith.select %155, %166, %145 : vector<8x128xi1>, vector<8x128xf32>
    %cst_43 = arith.constant dense<0xFF800000> : vector<8xf32>
    %168 = vector.multi_reduction <maximumf>, %167, %cst_43 [1] : vector<8x128xf32> to vector<8xf32>
    %169 = vector.shape_cast %168 : vector<8xf32> to vector<8x1xf32>
    %170 = vector.broadcast %169 : vector<8x1xf32> to vector<8x128xf32>
    %171 = arith.cmpf oeq, %167, %170 : vector<8x128xf32>
    %c128_i32_44 = arith.constant 128 : i32
    %172 = vector.broadcast %c128_i32_44 : i32 to vector<8x128xi32>
    %173 = arith.select %171, %10, %172 : vector<8x128xi1>, vector<8x128xi32>
    %cst_45 = arith.constant dense<2147483647> : vector<8xi32>
    %174 = vector.multi_reduction <minsi>, %173, %cst_45 [1] : vector<8x128xi32> to vector<8xi32>
    %175 = vector.shape_cast %174 : vector<8xi32> to vector<8x1xi32>
    %c7_i32 = arith.constant 7 : i32
    %176 = vector.broadcast %c7_i32 : i32 to vector<8x8xi32>
    %177 = arith.cmpi eq, %11, %176 : vector<8x8xi32>
    %178 = vector.shape_cast %169 : vector<8x1xf32> to vector<8x1xf32>
    %179 = vector.broadcast %178 : vector<8x1xf32> to vector<8x8xf32>
    %180 = arith.select %177, %179, %160 : vector<8x8xi1>, vector<8x8xf32>
    %c7_i32_46 = arith.constant 7 : i32
    %181 = vector.broadcast %c7_i32_46 : i32 to vector<8x8xi32>
    %182 = arith.cmpi eq, %11, %181 : vector<8x8xi32>
    %183 = vector.shape_cast %175 : vector<8x1xi32> to vector<8x1xi32>
    %184 = vector.broadcast %183 : vector<8x1xi32> to vector<8x8xi32>
    %185 = arith.select %182, %184, %165 : vector<8x8xi1>, vector<8x8xi32>
    %c128_i32_47 = arith.constant 128 : i32
    %186 = arith.muli %arg1, %c128_i32_47 : i32
    %187 = vector.broadcast %186 : i32 to vector<8x8xi32>
    %188 = arith.addi %185, %187 : vector<8x8xi32>
    %c0_48 = arith.constant 0 : index
    %c0_49 = arith.constant 0 : index
    %189 = vector.load %arg9[%c0_48, %c0_49] : memref<8x8xf32, #tpu.memory_space<vmem>>, vector<8x8xf32>
    %190 = tpu.concatenate %189, %180 in 1 : vector<8x8xf32>, vector<8x8xf32> -> vector<8x16xf32>
    %c0_50 = arith.constant 0 : index
    %c0_51 = arith.constant 0 : index
    %191 = vector.load %arg10[%c0_50, %c0_51] : memref<8x8xi32, #tpu.memory_space<vmem>>, vector<8x8xi32>
    %192 = tpu.concatenate %191, %188 in 1 : vector<8x8xi32>, vector<8x8xi32> -> vector<8x16xi32>
    %193 = tpu.iota {dimensions = array<i32: 1>} : vector<8x16xi32>
    %194 = tpu.iota {dimensions = array<i32: 1>} : vector<8x8xi32>
    %cst_52 = arith.constant 0.000000e+00 : f32
    %195 = vector.broadcast %cst_52 : f32 to vector<8x8xf32>
    %c0_i32_53 = arith.constant 0 : i32
    %196 = vector.broadcast %c0_i32_53 : i32 to vector<8x8xi32>
    %cst_54 = arith.constant dense<0xFF800000> : vector<8xf32>
    %197 = vector.multi_reduction <maximumf>, %190, %cst_54 [1] : vector<8x16xf32> to vector<8xf32>
    %198 = vector.shape_cast %197 : vector<8xf32> to vector<8x1xf32>
    %199 = vector.broadcast %198 : vector<8x1xf32> to vector<8x16xf32>
    %200 = arith.cmpf oeq, %190, %199 : vector<8x16xf32>
    %c16_i32 = arith.constant 16 : i32
    %201 = vector.broadcast %c16_i32 : i32 to vector<8x16xi32>
    %202 = arith.select %200, %193, %201 : vector<8x16xi1>, vector<8x16xi32>
    %cst_55 = arith.constant dense<2147483647> : vector<8xi32>
    %203 = vector.multi_reduction <minsi>, %202, %cst_55 [1] : vector<8x16xi32> to vector<8xi32>
    %204 = vector.shape_cast %203 : vector<8xi32> to vector<8x1xi32>
    %205 = vector.broadcast %204 : vector<8x1xi32> to vector<8x16xi32>
    %206 = arith.cmpi eq, %193, %205 : vector<8x16xi32>
    %c0_i32_56 = arith.constant 0 : i32
    %207 = vector.broadcast %c0_i32_56 : i32 to vector<8x16xi32>
    %208 = arith.select %206, %192, %207 : vector<8x16xi1>, vector<8x16xi32>
    %cst_57 = arith.constant dense<0> : vector<8xi32>
    %209 = vector.multi_reduction <add>, %208, %cst_57 [1] : vector<8x16xi32> to vector<8xi32>
    %210 = vector.shape_cast %209 : vector<8xi32> to vector<8x1xi32>
    %c0_i32_58 = arith.constant 0 : i32
    %211 = vector.broadcast %c0_i32_58 : i32 to vector<8x8xi32>
    %212 = arith.cmpi eq, %194, %211 : vector<8x8xi32>
    %213 = vector.shape_cast %198 : vector<8x1xf32> to vector<8x1xf32>
    %214 = vector.broadcast %213 : vector<8x1xf32> to vector<8x8xf32>
    %215 = arith.select %212, %214, %195 : vector<8x8xi1>, vector<8x8xf32>
    %c0_i32_59 = arith.constant 0 : i32
    %216 = vector.broadcast %c0_i32_59 : i32 to vector<8x8xi32>
    %217 = arith.cmpi eq, %194, %216 : vector<8x8xi32>
    %218 = vector.shape_cast %210 : vector<8x1xi32> to vector<8x1xi32>
    %219 = vector.broadcast %218 : vector<8x1xi32> to vector<8x8xi32>
    %220 = arith.select %217, %219, %196 : vector<8x8xi1>, vector<8x8xi32>
    %cst_60 = arith.constant 0xFF800000 : f32
    %221 = vector.broadcast %cst_60 : f32 to vector<8x16xf32>
    %222 = arith.select %206, %221, %190 : vector<8x16xi1>, vector<8x16xf32>
    %cst_61 = arith.constant dense<0xFF800000> : vector<8xf32>
    %223 = vector.multi_reduction <maximumf>, %222, %cst_61 [1] : vector<8x16xf32> to vector<8xf32>
    %224 = vector.shape_cast %223 : vector<8xf32> to vector<8x1xf32>
    %225 = vector.broadcast %224 : vector<8x1xf32> to vector<8x16xf32>
    %226 = arith.cmpf oeq, %222, %225 : vector<8x16xf32>
    %c16_i32_62 = arith.constant 16 : i32
    %227 = vector.broadcast %c16_i32_62 : i32 to vector<8x16xi32>
    %228 = arith.select %226, %193, %227 : vector<8x16xi1>, vector<8x16xi32>
    %cst_63 = arith.constant dense<2147483647> : vector<8xi32>
    %229 = vector.multi_reduction <minsi>, %228, %cst_63 [1] : vector<8x16xi32> to vector<8xi32>
    %230 = vector.shape_cast %229 : vector<8xi32> to vector<8x1xi32>
    %231 = vector.broadcast %230 : vector<8x1xi32> to vector<8x16xi32>
    %232 = arith.cmpi eq, %193, %231 : vector<8x16xi32>
    %c0_i32_64 = arith.constant 0 : i32
    %233 = vector.broadcast %c0_i32_64 : i32 to vector<8x16xi32>
    %234 = arith.select %232, %192, %233 : vector<8x16xi1>, vector<8x16xi32>
    %cst_65 = arith.constant dense<0> : vector<8xi32>
    %235 = vector.multi_reduction <add>, %234, %cst_65 [1] : vector<8x16xi32> to vector<8xi32>
    %236 = vector.shape_cast %235 : vector<8xi32> to vector<8x1xi32>
    %c1_i32_66 = arith.constant 1 : i32
    %237 = vector.broadcast %c1_i32_66 : i32 to vector<8x8xi32>
    %238 = arith.cmpi eq, %194, %237 : vector<8x8xi32>
    %239 = vector.shape_cast %224 : vector<8x1xf32> to vector<8x1xf32>
    %240 = vector.broadcast %239 : vector<8x1xf32> to vector<8x8xf32>
    %241 = arith.select %238, %240, %215 : vector<8x8xi1>, vector<8x8xf32>
    %c1_i32_67 = arith.constant 1 : i32
    %242 = vector.broadcast %c1_i32_67 : i32 to vector<8x8xi32>
    %243 = arith.cmpi eq, %194, %242 : vector<8x8xi32>
    %244 = vector.shape_cast %236 : vector<8x1xi32> to vector<8x1xi32>
    %245 = vector.broadcast %244 : vector<8x1xi32> to vector<8x8xi32>
    %246 = arith.select %243, %245, %220 : vector<8x8xi1>, vector<8x8xi32>
    %cst_68 = arith.constant 0xFF800000 : f32
    %247 = vector.broadcast %cst_68 : f32 to vector<8x16xf32>
    %248 = arith.select %232, %247, %222 : vector<8x16xi1>, vector<8x16xf32>
    %cst_69 = arith.constant dense<0xFF800000> : vector<8xf32>
    %249 = vector.multi_reduction <maximumf>, %248, %cst_69 [1] : vector<8x16xf32> to vector<8xf32>
    %250 = vector.shape_cast %249 : vector<8xf32> to vector<8x1xf32>
    %251 = vector.broadcast %250 : vector<8x1xf32> to vector<8x16xf32>
    %252 = arith.cmpf oeq, %248, %251 : vector<8x16xf32>
    %c16_i32_70 = arith.constant 16 : i32
    %253 = vector.broadcast %c16_i32_70 : i32 to vector<8x16xi32>
    %254 = arith.select %252, %193, %253 : vector<8x16xi1>, vector<8x16xi32>
    %cst_71 = arith.constant dense<2147483647> : vector<8xi32>
    %255 = vector.multi_reduction <minsi>, %254, %cst_71 [1] : vector<8x16xi32> to vector<8xi32>
    %256 = vector.shape_cast %255 : vector<8xi32> to vector<8x1xi32>
    %257 = vector.broadcast %256 : vector<8x1xi32> to vector<8x16xi32>
    %258 = arith.cmpi eq, %193, %257 : vector<8x16xi32>
    %c0_i32_72 = arith.constant 0 : i32
    %259 = vector.broadcast %c0_i32_72 : i32 to vector<8x16xi32>
    %260 = arith.select %258, %192, %259 : vector<8x16xi1>, vector<8x16xi32>
    %cst_73 = arith.constant dense<0> : vector<8xi32>
    %261 = vector.multi_reduction <add>, %260, %cst_73 [1] : vector<8x16xi32> to vector<8xi32>
    %262 = vector.shape_cast %261 : vector<8xi32> to vector<8x1xi32>
    %c2_i32_74 = arith.constant 2 : i32
    %263 = vector.broadcast %c2_i32_74 : i32 to vector<8x8xi32>
    %264 = arith.cmpi eq, %194, %263 : vector<8x8xi32>
    %265 = vector.shape_cast %250 : vector<8x1xf32> to vector<8x1xf32>
    %266 = vector.broadcast %265 : vector<8x1xf32> to vector<8x8xf32>
    %267 = arith.select %264, %266, %241 : vector<8x8xi1>, vector<8x8xf32>
    %c2_i32_75 = arith.constant 2 : i32
    %268 = vector.broadcast %c2_i32_75 : i32 to vector<8x8xi32>
    %269 = arith.cmpi eq, %194, %268 : vector<8x8xi32>
    %270 = vector.shape_cast %262 : vector<8x1xi32> to vector<8x1xi32>
    %271 = vector.broadcast %270 : vector<8x1xi32> to vector<8x8xi32>
    %272 = arith.select %269, %271, %246 : vector<8x8xi1>, vector<8x8xi32>
    %cst_76 = arith.constant 0xFF800000 : f32
    %273 = vector.broadcast %cst_76 : f32 to vector<8x16xf32>
    %274 = arith.select %258, %273, %248 : vector<8x16xi1>, vector<8x16xf32>
    %cst_77 = arith.constant dense<0xFF800000> : vector<8xf32>
    %275 = vector.multi_reduction <maximumf>, %274, %cst_77 [1] : vector<8x16xf32> to vector<8xf32>
    %276 = vector.shape_cast %275 : vector<8xf32> to vector<8x1xf32>
    %277 = vector.broadcast %276 : vector<8x1xf32> to vector<8x16xf32>
    %278 = arith.cmpf oeq, %274, %277 : vector<8x16xf32>
    %c16_i32_78 = arith.constant 16 : i32
    %279 = vector.broadcast %c16_i32_78 : i32 to vector<8x16xi32>
    %280 = arith.select %278, %193, %279 : vector<8x16xi1>, vector<8x16xi32>
    %cst_79 = arith.constant dense<2147483647> : vector<8xi32>
    %281 = vector.multi_reduction <minsi>, %280, %cst_79 [1] : vector<8x16xi32> to vector<8xi32>
    %282 = vector.shape_cast %281 : vector<8xi32> to vector<8x1xi32>
    %283 = vector.broadcast %282 : vector<8x1xi32> to vector<8x16xi32>
    %284 = arith.cmpi eq, %193, %283 : vector<8x16xi32>
    %c0_i32_80 = arith.constant 0 : i32
    %285 = vector.broadcast %c0_i32_80 : i32 to vector<8x16xi32>
    %286 = arith.select %284, %192, %285 : vector<8x16xi1>, vector<8x16xi32>
    %cst_81 = arith.constant dense<0> : vector<8xi32>
    %287 = vector.multi_reduction <add>, %286, %cst_81 [1] : vector<8x16xi32> to vector<8xi32>
    %288 = vector.shape_cast %287 : vector<8xi32> to vector<8x1xi32>
    %c3_i32_82 = arith.constant 3 : i32
    %289 = vector.broadcast %c3_i32_82 : i32 to vector<8x8xi32>
    %290 = arith.cmpi eq, %194, %289 : vector<8x8xi32>
    %291 = vector.shape_cast %276 : vector<8x1xf32> to vector<8x1xf32>
    %292 = vector.broadcast %291 : vector<8x1xf32> to vector<8x8xf32>
    %293 = arith.select %290, %292, %267 : vector<8x8xi1>, vector<8x8xf32>
    %c3_i32_83 = arith.constant 3 : i32
    %294 = vector.broadcast %c3_i32_83 : i32 to vector<8x8xi32>
    %295 = arith.cmpi eq, %194, %294 : vector<8x8xi32>
    %296 = vector.shape_cast %288 : vector<8x1xi32> to vector<8x1xi32>
    %297 = vector.broadcast %296 : vector<8x1xi32> to vector<8x8xi32>
    %298 = arith.select %295, %297, %272 : vector<8x8xi1>, vector<8x8xi32>
    %cst_84 = arith.constant 0xFF800000 : f32
    %299 = vector.broadcast %cst_84 : f32 to vector<8x16xf32>
    %300 = arith.select %284, %299, %274 : vector<8x16xi1>, vector<8x16xf32>
    %cst_85 = arith.constant dense<0xFF800000> : vector<8xf32>
    %301 = vector.multi_reduction <maximumf>, %300, %cst_85 [1] : vector<8x16xf32> to vector<8xf32>
    %302 = vector.shape_cast %301 : vector<8xf32> to vector<8x1xf32>
    %303 = vector.broadcast %302 : vector<8x1xf32> to vector<8x16xf32>
    %304 = arith.cmpf oeq, %300, %303 : vector<8x16xf32>
    %c16_i32_86 = arith.constant 16 : i32
    %305 = vector.broadcast %c16_i32_86 : i32 to vector<8x16xi32>
    %306 = arith.select %304, %193, %305 : vector<8x16xi1>, vector<8x16xi32>
    %cst_87 = arith.constant dense<2147483647> : vector<8xi32>
    %307 = vector.multi_reduction <minsi>, %306, %cst_87 [1] : vector<8x16xi32> to vector<8xi32>
    %308 = vector.shape_cast %307 : vector<8xi32> to vector<8x1xi32>
    %309 = vector.broadcast %308 : vector<8x1xi32> to vector<8x16xi32>
    %310 = arith.cmpi eq, %193, %309 : vector<8x16xi32>
    %c0_i32_88 = arith.constant 0 : i32
    %311 = vector.broadcast %c0_i32_88 : i32 to vector<8x16xi32>
    %312 = arith.select %310, %192, %311 : vector<8x16xi1>, vector<8x16xi32>
    %cst_89 = arith.constant dense<0> : vector<8xi32>
    %313 = vector.multi_reduction <add>, %312, %cst_89 [1] : vector<8x16xi32> to vector<8xi32>
    %314 = vector.shape_cast %313 : vector<8xi32> to vector<8x1xi32>
    %c4_i32_90 = arith.constant 4 : i32
    %315 = vector.broadcast %c4_i32_90 : i32 to vector<8x8xi32>
    %316 = arith.cmpi eq, %194, %315 : vector<8x8xi32>
    %317 = vector.shape_cast %302 : vector<8x1xf32> to vector<8x1xf32>
    %318 = vector.broadcast %317 : vector<8x1xf32> to vector<8x8xf32>
    %319 = arith.select %316, %318, %293 : vector<8x8xi1>, vector<8x8xf32>
    %c4_i32_91 = arith.constant 4 : i32
    %320 = vector.broadcast %c4_i32_91 : i32 to vector<8x8xi32>
    %321 = arith.cmpi eq, %194, %320 : vector<8x8xi32>
    %322 = vector.shape_cast %314 : vector<8x1xi32> to vector<8x1xi32>
    %323 = vector.broadcast %322 : vector<8x1xi32> to vector<8x8xi32>
    %324 = arith.select %321, %323, %298 : vector<8x8xi1>, vector<8x8xi32>
    %cst_92 = arith.constant 0xFF800000 : f32
    %325 = vector.broadcast %cst_92 : f32 to vector<8x16xf32>
    %326 = arith.select %310, %325, %300 : vector<8x16xi1>, vector<8x16xf32>
    %cst_93 = arith.constant dense<0xFF800000> : vector<8xf32>
    %327 = vector.multi_reduction <maximumf>, %326, %cst_93 [1] : vector<8x16xf32> to vector<8xf32>
    %328 = vector.shape_cast %327 : vector<8xf32> to vector<8x1xf32>
    %329 = vector.broadcast %328 : vector<8x1xf32> to vector<8x16xf32>
    %330 = arith.cmpf oeq, %326, %329 : vector<8x16xf32>
    %c16_i32_94 = arith.constant 16 : i32
    %331 = vector.broadcast %c16_i32_94 : i32 to vector<8x16xi32>
    %332 = arith.select %330, %193, %331 : vector<8x16xi1>, vector<8x16xi32>
    %cst_95 = arith.constant dense<2147483647> : vector<8xi32>
    %333 = vector.multi_reduction <minsi>, %332, %cst_95 [1] : vector<8x16xi32> to vector<8xi32>
    %334 = vector.shape_cast %333 : vector<8xi32> to vector<8x1xi32>
    %335 = vector.broadcast %334 : vector<8x1xi32> to vector<8x16xi32>
    %336 = arith.cmpi eq, %193, %335 : vector<8x16xi32>
    %c0_i32_96 = arith.constant 0 : i32
    %337 = vector.broadcast %c0_i32_96 : i32 to vector<8x16xi32>
    %338 = arith.select %336, %192, %337 : vector<8x16xi1>, vector<8x16xi32>
    %cst_97 = arith.constant dense<0> : vector<8xi32>
    %339 = vector.multi_reduction <add>, %338, %cst_97 [1] : vector<8x16xi32> to vector<8xi32>
    %340 = vector.shape_cast %339 : vector<8xi32> to vector<8x1xi32>
    %c5_i32_98 = arith.constant 5 : i32
    %341 = vector.broadcast %c5_i32_98 : i32 to vector<8x8xi32>
    %342 = arith.cmpi eq, %194, %341 : vector<8x8xi32>
    %343 = vector.shape_cast %328 : vector<8x1xf32> to vector<8x1xf32>
    %344 = vector.broadcast %343 : vector<8x1xf32> to vector<8x8xf32>
    %345 = arith.select %342, %344, %319 : vector<8x8xi1>, vector<8x8xf32>
    %c5_i32_99 = arith.constant 5 : i32
    %346 = vector.broadcast %c5_i32_99 : i32 to vector<8x8xi32>
    %347 = arith.cmpi eq, %194, %346 : vector<8x8xi32>
    %348 = vector.shape_cast %340 : vector<8x1xi32> to vector<8x1xi32>
    %349 = vector.broadcast %348 : vector<8x1xi32> to vector<8x8xi32>
    %350 = arith.select %347, %349, %324 : vector<8x8xi1>, vector<8x8xi32>
    %cst_100 = arith.constant 0xFF800000 : f32
    %351 = vector.broadcast %cst_100 : f32 to vector<8x16xf32>
    %352 = arith.select %336, %351, %326 : vector<8x16xi1>, vector<8x16xf32>
    %cst_101 = arith.constant dense<0xFF800000> : vector<8xf32>
    %353 = vector.multi_reduction <maximumf>, %352, %cst_101 [1] : vector<8x16xf32> to vector<8xf32>
    %354 = vector.shape_cast %353 : vector<8xf32> to vector<8x1xf32>
    %355 = vector.broadcast %354 : vector<8x1xf32> to vector<8x16xf32>
    %356 = arith.cmpf oeq, %352, %355 : vector<8x16xf32>
    %c16_i32_102 = arith.constant 16 : i32
    %357 = vector.broadcast %c16_i32_102 : i32 to vector<8x16xi32>
    %358 = arith.select %356, %193, %357 : vector<8x16xi1>, vector<8x16xi32>
    %cst_103 = arith.constant dense<2147483647> : vector<8xi32>
    %359 = vector.multi_reduction <minsi>, %358, %cst_103 [1] : vector<8x16xi32> to vector<8xi32>
    %360 = vector.shape_cast %359 : vector<8xi32> to vector<8x1xi32>
    %361 = vector.broadcast %360 : vector<8x1xi32> to vector<8x16xi32>
    %362 = arith.cmpi eq, %193, %361 : vector<8x16xi32>
    %c0_i32_104 = arith.constant 0 : i32
    %363 = vector.broadcast %c0_i32_104 : i32 to vector<8x16xi32>
    %364 = arith.select %362, %192, %363 : vector<8x16xi1>, vector<8x16xi32>
    %cst_105 = arith.constant dense<0> : vector<8xi32>
    %365 = vector.multi_reduction <add>, %364, %cst_105 [1] : vector<8x16xi32> to vector<8xi32>
    %366 = vector.shape_cast %365 : vector<8xi32> to vector<8x1xi32>
    %c6_i32_106 = arith.constant 6 : i32
    %367 = vector.broadcast %c6_i32_106 : i32 to vector<8x8xi32>
    %368 = arith.cmpi eq, %194, %367 : vector<8x8xi32>
    %369 = vector.shape_cast %354 : vector<8x1xf32> to vector<8x1xf32>
    %370 = vector.broadcast %369 : vector<8x1xf32> to vector<8x8xf32>
    %371 = arith.select %368, %370, %345 : vector<8x8xi1>, vector<8x8xf32>
    %c6_i32_107 = arith.constant 6 : i32
    %372 = vector.broadcast %c6_i32_107 : i32 to vector<8x8xi32>
    %373 = arith.cmpi eq, %194, %372 : vector<8x8xi32>
    %374 = vector.shape_cast %366 : vector<8x1xi32> to vector<8x1xi32>
    %375 = vector.broadcast %374 : vector<8x1xi32> to vector<8x8xi32>
    %376 = arith.select %373, %375, %350 : vector<8x8xi1>, vector<8x8xi32>
    %cst_108 = arith.constant 0xFF800000 : f32
    %377 = vector.broadcast %cst_108 : f32 to vector<8x16xf32>
    %378 = arith.select %362, %377, %352 : vector<8x16xi1>, vector<8x16xf32>
    %cst_109 = arith.constant dense<0xFF800000> : vector<8xf32>
    %379 = vector.multi_reduction <maximumf>, %378, %cst_109 [1] : vector<8x16xf32> to vector<8xf32>
    %380 = vector.shape_cast %379 : vector<8xf32> to vector<8x1xf32>
    %381 = vector.broadcast %380 : vector<8x1xf32> to vector<8x16xf32>
    %382 = arith.cmpf oeq, %378, %381 : vector<8x16xf32>
    %c16_i32_110 = arith.constant 16 : i32
    %383 = vector.broadcast %c16_i32_110 : i32 to vector<8x16xi32>
    %384 = arith.select %382, %193, %383 : vector<8x16xi1>, vector<8x16xi32>
    %cst_111 = arith.constant dense<2147483647> : vector<8xi32>
    %385 = vector.multi_reduction <minsi>, %384, %cst_111 [1] : vector<8x16xi32> to vector<8xi32>
    %386 = vector.shape_cast %385 : vector<8xi32> to vector<8x1xi32>
    %387 = vector.broadcast %386 : vector<8x1xi32> to vector<8x16xi32>
    %388 = arith.cmpi eq, %193, %387 : vector<8x16xi32>
    %c0_i32_112 = arith.constant 0 : i32
    %389 = vector.broadcast %c0_i32_112 : i32 to vector<8x16xi32>
    %390 = arith.select %388, %192, %389 : vector<8x16xi1>, vector<8x16xi32>
    %cst_113 = arith.constant dense<0> : vector<8xi32>
    %391 = vector.multi_reduction <add>, %390, %cst_113 [1] : vector<8x16xi32> to vector<8xi32>
    %392 = vector.shape_cast %391 : vector<8xi32> to vector<8x1xi32>
    %c7_i32_114 = arith.constant 7 : i32
    %393 = vector.broadcast %c7_i32_114 : i32 to vector<8x8xi32>
    %394 = arith.cmpi eq, %194, %393 : vector<8x8xi32>
    %395 = vector.shape_cast %380 : vector<8x1xf32> to vector<8x1xf32>
    %396 = vector.broadcast %395 : vector<8x1xf32> to vector<8x8xf32>
    %397 = arith.select %394, %396, %371 : vector<8x8xi1>, vector<8x8xf32>
    %c7_i32_115 = arith.constant 7 : i32
    %398 = vector.broadcast %c7_i32_115 : i32 to vector<8x8xi32>
    %399 = arith.cmpi eq, %194, %398 : vector<8x8xi32>
    %400 = vector.shape_cast %392 : vector<8x1xi32> to vector<8x1xi32>
    %401 = vector.broadcast %400 : vector<8x1xi32> to vector<8x8xi32>
    %402 = arith.select %399, %401, %376 : vector<8x8xi1>, vector<8x8xi32>
    %c0_116 = arith.constant 0 : index
    %c0_117 = arith.constant 0 : index
    %403 = vector.load %arg9[%c0_116, %c0_117] : memref<8x8xf32, #tpu.memory_space<vmem>>, vector<8x8xf32>
    tpu.vector_store %arg9[%c0_116, %c0_117], %397 {strides = array<i32>} : memref<8x8xf32, #tpu.memory_space<vmem>>, vector<8x8xf32>,
    %c0_118 = arith.constant 0 : index
    %c0_119 = arith.constant 0 : index
    %404 = vector.load %arg10[%c0_118, %c0_119] : memref<8x8xi32, #tpu.memory_space<vmem>>, vector<8x8xi32>
    tpu.vector_store %arg10[%c0_118, %c0_119], %402 {strides = array<i32>} : memref<8x8xi32, #tpu.memory_space<vmem>>, vector<8x8xi32>,
    %c1_i32_120 = arith.constant 1 : i32
    %405 = arith.cmpi eq, %arg1, %c1_i32_120 : i32
    %406 = arith.extui %405 : i1 to i32
    %c0_i32_121 = arith.constant 0 : i32
    %407 = arith.cmpi ne, %406, %c0_i32_121 : i32
    scf.if %407 {
      %c0_122 = arith.constant 0 : index
      %c0_123 = arith.constant 0 : index
      %408 = vector.load %arg5[%c0_122, %c0_123] : memref<8x8xf32, #tpu.memory_space<vmem>>, vector<8x8xf32>
      %cst_124 = arith.constant 0.000000e+00 : f32
      %409 = vector.broadcast %cst_124 : f32 to vector<8x8xf32>
      %c0_125 = arith.constant 0 : index
      %c0_126 = arith.constant 0 : index
      %410 = vector.load %arg6[%c0_125, %c0_126] : memref<1x8xf32, #tpu.memory_space<vmem>>, vector<1x8xf32>
      %411 = vector.broadcast %410 : vector<1x8xf32> to vector<8x8xf32>
      %412 = arith.addf %409, %411 : vector<8x8xf32>
      %413 = vector.extract_strided_slice %397 {offsets = [0, 0], sizes = [8, 1], strides = [1, 1]} : vector<8x8xf32> to vector<8x1xf32>
      %414 = vector.extract_strided_slice %408 {offsets = [0, 0], sizes = [1, 8], strides = [1, 1]} : vector<8x8xf32> to vector<1x8xf32>
      %415 = vector.broadcast %413 : vector<8x1xf32> to vector<8x8xf32>
      %416 = vector.broadcast %414 : vector<1x8xf32> to vector<8x8xf32>
      %417 = arith.mulf %415, %416 : vector<8x8xf32>
      %418 = arith.addf %412, %417 : vector<8x8xf32>
      %419 = vector.extract_strided_slice %397 {offsets = [0, 1], sizes = [8, 1], strides = [1, 1]} : vector<8x8xf32> to vector<8x1xf32>
      %420 = vector.extract_strided_slice %408 {offsets = [1, 0], sizes = [1, 8], strides = [1, 1]} : vector<8x8xf32> to vector<1x8xf32>
      %421 = vector.broadcast %419 : vector<8x1xf32> to vector<8x8xf32>
      %422 = vector.broadcast %420 : vector<1x8xf32> to vector<8x8xf32>
      %423 = arith.mulf %421, %422 : vector<8x8xf32>
      %424 = arith.addf %418, %423 : vector<8x8xf32>
      %425 = vector.extract_strided_slice %397 {offsets = [0, 2], sizes = [8, 1], strides = [1, 1]} : vector<8x8xf32> to vector<8x1xf32>
      %426 = vector.extract_strided_slice %408 {offsets = [2, 0], sizes = [1, 8], strides = [1, 1]} : vector<8x8xf32> to vector<1x8xf32>
      %427 = vector.broadcast %425 : vector<8x1xf32> to vector<8x8xf32>
      %428 = vector.broadcast %426 : vector<1x8xf32> to vector<8x8xf32>
      %429 = arith.mulf %427, %428 : vector<8x8xf32>
      %430 = arith.addf %424, %429 : vector<8x8xf32>
      %431 = vector.extract_strided_slice %397 {offsets = [0, 3], sizes = [8, 1], strides = [1, 1]} : vector<8x8xf32> to vector<8x1xf32>
      %432 = vector.extract_strided_slice %408 {offsets = [3, 0], sizes = [1, 8], strides = [1, 1]} : vector<8x8xf32> to vector<1x8xf32>
      %433 = vector.broadcast %431 : vector<8x1xf32> to vector<8x8xf32>
      %434 = vector.broadcast %432 : vector<1x8xf32> to vector<8x8xf32>
      %435 = arith.mulf %433, %434 : vector<8x8xf32>
      %436 = arith.addf %430, %435 : vector<8x8xf32>
      %437 = vector.extract_strided_slice %397 {offsets = [0, 4], sizes = [8, 1], strides = [1, 1]} : vector<8x8xf32> to vector<8x1xf32>
      %438 = vector.extract_strided_slice %408 {offsets = [4, 0], sizes = [1, 8], strides = [1, 1]} : vector<8x8xf32> to vector<1x8xf32>
      %439 = vector.broadcast %437 : vector<8x1xf32> to vector<8x8xf32>
      %440 = vector.broadcast %438 : vector<1x8xf32> to vector<8x8xf32>
      %441 = arith.mulf %439, %440 : vector<8x8xf32>
      %442 = arith.addf %436, %441 : vector<8x8xf32>
      %443 = vector.extract_strided_slice %397 {offsets = [0, 5], sizes = [8, 1], strides = [1, 1]} : vector<8x8xf32> to vector<8x1xf32>
      %444 = vector.extract_strided_slice %408 {offsets = [5, 0], sizes = [1, 8], strides = [1, 1]} : vector<8x8xf32> to vector<1x8xf32>
      %445 = vector.broadcast %443 : vector<8x1xf32> to vector<8x8xf32>
      %446 = vector.broadcast %444 : vector<1x8xf32> to vector<8x8xf32>
      %447 = arith.mulf %445, %446 : vector<8x8xf32>
      %448 = arith.addf %442, %447 : vector<8x8xf32>
      %449 = vector.extract_strided_slice %397 {offsets = [0, 6], sizes = [8, 1], strides = [1, 1]} : vector<8x8xf32> to vector<8x1xf32>
      %450 = vector.extract_strided_slice %408 {offsets = [6, 0], sizes = [1, 8], strides = [1, 1]} : vector<8x8xf32> to vector<1x8xf32>
      %451 = vector.broadcast %449 : vector<8x1xf32> to vector<8x8xf32>
      %452 = vector.broadcast %450 : vector<1x8xf32> to vector<8x8xf32>
      %453 = arith.mulf %451, %452 : vector<8x8xf32>
      %454 = arith.addf %448, %453 : vector<8x8xf32>
      %455 = vector.extract_strided_slice %397 {offsets = [0, 7], sizes = [8, 1], strides = [1, 1]} : vector<8x8xf32> to vector<8x1xf32>
      %456 = vector.extract_strided_slice %408 {offsets = [7, 0], sizes = [1, 8], strides = [1, 1]} : vector<8x8xf32> to vector<1x8xf32>
      %457 = vector.broadcast %455 : vector<8x1xf32> to vector<8x8xf32>
      %458 = vector.broadcast %456 : vector<1x8xf32> to vector<8x8xf32>
      %459 = arith.mulf %457, %458 : vector<8x8xf32>
      %460 = arith.addf %454, %459 : vector<8x8xf32>
      %cst_127 = arith.constant dense<0xFF800000> : vector<8xf32>
      %461 = vector.multi_reduction <maximumf>, %460, %cst_127 [1] : vector<8x8xf32> to vector<8xf32>
      %462 = vector.shape_cast %461 : vector<8xf32> to vector<8x1xf32>
      %463 = vector.broadcast %462 : vector<8x1xf32> to vector<8x8xf32>
      %464 = arith.subf %460, %463 : vector<8x8xf32>
      %465 = math.exp %464 : vector<8x8xf32>
      %cst_128 = arith.constant dense<0.000000e+00> : vector<8xf32>
      %466 = vector.multi_reduction <add>, %465, %cst_128 [1] : vector<8x8xf32> to vector<8xf32>
      %467 = vector.shape_cast %466 : vector<8xf32> to vector<8x1xf32>
      %468 = tpu.reciprocal %467 {approx = true} : vector<8x1xf32> -> vector<8x1xf32>
      %469 = vector.broadcast %468 : vector<8x1xf32> to vector<8x8xf32>
      %470 = arith.mulf %465, %469 : vector<8x8xf32>
      %c0_129 = arith.constant 0 : index
      %c0_130 = arith.constant 0 : index
      %471 = vector.load %arg7[%c0_129, %c0_130] : memref<8x8xf32, #tpu.memory_space<vmem>>, vector<8x8xf32>
      tpu.vector_store %arg7[%c0_129, %c0_130], %470 {strides = array<i32>} : memref<8x8xf32, #tpu.memory_space<vmem>>, vector<8x8xf32>,
      %c0_131 = arith.constant 0 : index
      %c0_132 = arith.constant 0 : index
      %472 = vector.load %arg8[%c0_131, %c0_132] : memref<8x8xi32, #tpu.memory_space<vmem>>, vector<8x8xi32>
      tpu.vector_store %arg8[%c0_131, %c0_132], %402 {strides = array<i32>} : memref<8x8xi32, #tpu.memory_space<vmem>>, vector<8x8xi32>,
    } else {
    }
    return
  }
  func.func @transform_0(%arg0: i32, %arg1: i32) -> (i32, i32) {
    %c0_i32 = arith.constant 0 : i32
    %c0_i32_0 = arith.constant 0 : i32
    return %arg0, %c0_i32 : i32, i32
  }
  func.func @transform_1(%arg0: i32, %arg1: i32) -> (i32, i32) {
    %c0_i32 = arith.constant 0 : i32
    %c0_i32_0 = arith.constant 0 : i32
    return %c0_i32, %arg1 : i32, i32
  }
  func.func @transform_2(%arg0: i32, %arg1: i32) -> (i32, i32) {
    %c0_i32 = arith.constant 0 : i32
    %c0_i32_0 = arith.constant 0 : i32
    return %c0_i32, %arg1 : i32, i32
  }
  func.func @transform_3(%arg0: i32, %arg1: i32) -> (i32, i32) {
    %c0_i32 = arith.constant 0 : i32
    %c0_i32_0 = arith.constant 0 : i32
    %c0_i32_1 = arith.constant 0 : i32
    return %c0_i32, %c0_i32_0 : i32, i32
  }
  func.func @transform_4(%arg0: i32, %arg1: i32) -> (i32, i32) {
    %c0_i32 = arith.constant 0 : i32
    %c0_i32_0 = arith.constant 0 : i32
    %c0_i32_1 = arith.constant 0 : i32
    return %c0_i32, %c0_i32_0 : i32, i32
  }
  func.func @transform_5(%arg0: i32, %arg1: i32) -> (i32, i32) {
    %c0_i32 = arith.constant 0 : i32
    %c0_i32_0 = arith.constant 0 : i32
    return %arg0, %c0_i32 : i32, i32
  }
  func.func @transform_6(%arg0: i32, %arg1: i32) -> (i32, i32) {
    %c0_i32 = arith.constant 0 : i32
    %c0_i32_0 = arith.constant 0 : i32
    return %arg0, %c0_i32 : i32, i32
  }
}

</mosaic_0001>

<bundles_post_ra>
// kernel: tpu_custom_call.1
= control target key start
LH: loop header
LB: loop body
LE: loop exit
PB: predicated region body
PF: predicated region fallthrough
CT: control target
= control target key end

     0   :  { %s2095_s0 = inlined_call_operand.hbm [shape: f32[16,32], index: 0, kind: input, shape index: {}]   ;;  %s2096_s1 = inlined_call_operand.hbm [shape: bf16[32,256], index: 1, kind: input, shape index: {}]   ;;  %s2097_s2 = inlined_call_operand.vmem [shape: f32[1,256], index: 2, kind: input, shape index: {}]   ;;  %s2098_s3 = inlined_call_operand.vmem [shape: f32[8,8], index: 3, kind: input, shape index: {}]   ;;  %s2099_s4 = inlined_call_operand.vmem [shape: f32[1,8], index: 4, kind: input, shape index: {}]   ;;  %s2100_s5 = inlined_call_operand.vmem [shape: f32[16,8], index: 5, kind: output, shape index: {0}]   ;;  %s2101_s6 = inlined_call_operand.vmem [shape: s32[16,8], index: 6, kind: output, shape index: {1}]  }
   0x1   :  { %2111 = sst [smem:[#allocation14_spill]] %s2095_s0 }
   0x2   :  { %12 = vsyncpa [#allocation5], 0 }
   0x3   :  { %14 = vsyncpa [#allocation5 + $0x1], 0 }
   0x4   :  { %15 = vsyncpa [#allocation7], 0 }
   0x5   :  { %17 = vsyncpa [#allocation7 + $0x1], 0  ;;  %s1544_s21 = smov 0   ;;  %s1546_s22 = smov 0  }
   0x6   :  { %s1548_s23 = smov 0   ;;  %s1550_s24 = smov 0  }
   0x7   :  { %s1552_s25 = smov 0   ;;  %s1554_s26 = smov 0  }
   0x8   :  { %s1556_s27 = smov 0   ;;  %s1558_s28 = smov 0  }
   0x9   :  { %s1560_s29 = smov 0   ;;  %s1562_s30 = smov 0  }
   0xa   :  { %s1564_s7 = smov 0  }
   0xb LB: > { %2112 = sst [smem:[#allocation10_spill]] %s1481_s29  ;;  %s1170_s8 = sadd.s32 4294967295, %s1489_s7   ;;  %s1489_s7 = sphi %s1564_s7, %s23_s7   ;;  %s1485_s30 = sphi %s1562_s30, %s2134_s30   ;;  %s1481_s29 = sphi %s1560_s29, %s2133_s29   ;;  %s1477_s28 = sphi %s1558_s28, %s2132_s28   ;;  %s1473_s27 = sphi %s1556_s27, %s2131_s27   ;;  %s1469_s26 = sphi %s1554_s26, %s2140_s26   ;;  %s1465_s25 = sphi %s1552_s25, %s2139_s25   ;;  %s1461_s24 = sphi %s1550_s24, %s2138_s24   ;;  %s1457_s23 = sphi %s1548_s23, %s2137_s23   ;;  %s1453_s22 = sphi %s1546_s22, %s2136_s22   ;;  %s1449_s21 = sphi %s1544_s21, %s2135_s21  }
   0xc   : > { %2113 = sst [smem:[#allocation11_spill]] %s1485_s30  ;;  %s32_s9 = sadd.s32 1, %s1481_s29 }
   0xd   : > { %p33_p0 = scmp.ge.s32.totalorder %s32_s9, 2  ;;  %s35_s10 = sadd.s32 1, %s1485_s30 }
   0xe   : > { %s42_s11 = sadd.s32 1, %s1469_s26  ;;  %p49_p1 = scmp.ne.s32.totalorder %s1469_s26, %s1465_s25 }
   0xf   : > { %s2142_s9 = smov (%p33_p0, %s32_s9), 0  ;;  %s2144_s10 = smov (!%p33_p0, %s35_s10), %s1485_s30 }
  0x10   : > { %2114 = sst [smem:[#allocation12_spill]] %s2142_s9  ;;  %p50_p2 = scmp.eq.s32.totalorder %s1489_s7, 0 }
  0x11   : > { %p55_p3 = scmp.ne.s32.totalorder %s1465_s25, %s1461_s24  ;;  %p37_p4 = scmp.ge.s32.totalorder %s2144_s10, 2 }
  0x12   : > { %p1608_p5 = scmp.eq.s32.totalorder %s1170_s8, 0  ;;  %p1614_p6 = por %p50_p2, %p49_p1 }
  0x13   : > { %s65_s14 = ssub.s32 %s1481_s29, %s2142_s9  ;;  %s2146_s10 = smov (%p37_p4, %s2144_s10), 0 }
  0x14   : > { %2117 = sst [smem:[#allocation13_spill]] %s2146_s10  ;;  %p1624_p7 = por %p1608_p5, %p55_p3 }
  0x15   : > { %p66_p8 = scmp.eq.s32.totalorder %s65_s14, 0  ;;  %s39_s16 = ssub.s32 %s1485_s30, %s2146_s10 }
  0x16   : > { %s2118_s15 = scalar_select %p1624_p7, 1, 0 }
  0x17   : > { %s68_s17 = sadd.s32 1, %s1457_s23  ;;  %p40_p9 = scmp.eq.s32.totalorder %s39_s16, 0 }
  0x18   : > { %p75_p10 = scmp.ne.s32.totalorder %s1457_s23, %s1453_s22  ;;  %p81_p12 = scmp.ne.s32.totalorder %s1453_s22, %s1449_s21 }
  0x19   : > { %s1634_s18 = scalar_select %p66_p8, %s1457_s23, %s68_s17  }
  0x1a   : > { %s1637_s19 = scalar_select %p40_p9, %s1469_s26, %s42_s11  }
  0x1b   : > { %p77_p11 = por %p75_p10, %p50_p2  ;;  %p1215_p13 = scmp.lt.s32.totalorder %s1489_s7, 4 }
  0x1c   : > { %p1646_p0 = por %p81_p12, %p1608_p5  ;;  %s231_s24 = sand.u32 1, %s1469_s26  }
  0x1d   : > { %s1174_s8 = sshll.u32 %s231_s24, 3  ;;  %s1175_s14 = sshll.u32 %s1485_s30, 7 }
  0x1e   : > { %s2119_s20 = scalar_select %p1646_p0, 1, 0 }
  0x1f   : > { %s2120_s0 = sld [smem:[#allocation14_spill]]  ;;  %s235_s11 = scalar_lea.vmem [#allocation4], %s1174_s8 }
  0x20   : > { %s242_s9 = sshll.u32 %s235_s11, 4  ;;  %p1661_p1 = pnand %p1215_p13, %p1614_p6  ;;  %s1657_s9 = int_to_ptr.vmem [resolvable:$true] %s242_s9 }
  0x21   : > { %p1665_p2 = pnand %p1215_p13, %p77_p11  ;;  %s232_s10 = scalar_lea.sflag [#allocation5], %s231_s24 }
  0x22   : > { %p1337_p8 = pneg %p1661_p1 }
  0x25   : > { %s1655_s17 = scalar_lea.hbm %s2120_s0, %s1175_s14  ;;  %s1340_s16 = scalar_lea.hbm %s2120_s0, 256 }
  0x26   : > { %s1335_s14 = scalar_lea.hbm %s1655_s17, 128  ;;  %p1341_p10 = scmp.lt.u32.totalorder %s1655_s17, %s2120_s0 }
  0x27   : > { %p1336_p5 = scmp.ne.s32.totalorder %s1655_s17, %s1335_s14  ;;  %p1342_p11 = scmp.lt.u32.totalorder %s1340_s16, %s1335_s14 }
  0x28   : > { %p1344_p13 = scmp.lt.u32.totalorder %s1335_s14, %s1655_s17 }
  0x29   : > { %p1338_p9 = pnand %p1337_p8, %p1336_p5  ;;  %p1343_p12 = por %p1342_p11, %p1341_p10 }
  0x2b   : > { %p1339_p6 = pneg %p1338_p9  ;;  %p1345_p3 = por %p1344_p13, %p1343_p12 }
  0x2d   : > { %p1346_p4 = pnand %p1345_p3, %p1339_p6 }
  0x2f   : > { %1349 = shalt.err (!%p1346_p4)
}
  0x30   : > { %s1350_s24 = scalar_lea.vmem %s1657_s9, 128  ;;  %s1491_s13 = smov [#allocation4]  }
  0x31   : > { %p1351_p5 = scmp.ne.s32.totalorder %s1657_s9, %s1350_s24  ;;  %s1355_s8 = sshll.u32 %s1491_s13, 4  ;;  %s1356_s8 = int_to_ptr.vmem [resolvable:$false] %s1355_s8 }
  0x32   : > { %s1357_s30 = scalar_lea.vmem %s1356_s8, 256  ;;  %p1358_p7 = scmp.lt.s32.totalorder %s1657_s9, %s1356_s8 }
  0x33   : > { %p1353_p9 = pnand %p1351_p5, %p1337_p8  ;;  %p1359_p10 = scmp.lt.s32.totalorder %s1357_s30, %s1350_s24 }
  0x35   : > { %p1354_p0 = pneg %p1353_p9  ;;  %p1360_p11 = por %p1359_p10, %p1358_p7 }
  0x37   : > { %p1361_p12 = pnand %p1360_p11, %p1354_p0 }
  0x39   : > { %1364 = shalt.err (!%p1361_p12)
}
  0x3a   : > { %1211 = dma.hbm_to_vmem [thread:$0]  (!%p1661_p1), %s1655_s17, 128, %s1657_s9, %s232_s10  }
  0x3b   : > { %p2123_p3 = scmp.lt.s32.totalorder %s1489_s7, 5  ;;  %p2124_p4 = scmp.ge.s32.totalorder %s1489_s7, 1 }
  0x3c   : > { %s249_s16 = sand.u32 1, %s1457_s23   ;;  %s1177_s11 = sshll.u32 %s1481_s29, 6 }
  0x3d   : > { %p1700_p8 = pnand %p2124_p4, %p2123_p3  ;;  %s1176_s24 = sshll.u32 %s249_s16, 4 }
  0x3e   : > { %s1709_s8 = scalar_lea.hbm %s2096_s1, %s1177_s11  ;;  %s253_s30 = scalar_lea.vmem [#allocation6], %s1176_s24 }
  0x3f   : > { %s259_s9 = sshll.u32 %s253_s30, 4  ;;  %s1713_s17 = scalar_lea.sflag [#allocation7], %s249_s16  ;;  %s1711_s9 = int_to_ptr.vmem [resolvable:$true] %s259_s9 }
  0x40   : > { %s1365_s10 = scalar_lea.hbm %s1709_s8, 256  ;;  %p1367_p0 = pneg %p1665_p2 }
  0x41   : > { %p1366_p7 = scmp.ne.s32.totalorder %s1709_s8, %s1365_s10  ;;  %s1370_s21 = scalar_lea.hbm %s2096_s1, 512 }
  0x42   : > { %p1371_p13 = scmp.lt.u32.totalorder %s1709_s8, %s2096_s1  ;;  %p1372_p5 = scmp.lt.u32.totalorder %s1370_s21, %s1365_s10 }
  0x43   : > { %p1368_p1 = pnand %p1367_p0, %p1366_p7  ;;  %p1374_p10 = scmp.lt.u32.totalorder %s1365_s10, %s1709_s8 }
  0x44   : > { %p1373_p9 = por %p1372_p5, %p1371_p13 }
  0x45   : > { %p1369_p6 = pneg %p1368_p1 }
  0x46   : > { %p1375_p11 = por %p1374_p10, %p1373_p9 }
  0x48   : > { %p1376_p12 = pnand %p1375_p11, %p1369_p6 }
  0x4a   : > { %1379 = shalt.err (!%p1376_p12)
}
  0x4b   : > { %s1380_s16 = scalar_lea.vmem %s1711_s9, 256  ;;  %s1492_s24 = smov [#allocation6]  }
  0x4c   : > { %p1381_p3 = scmp.ne.s32.totalorder %s1711_s9, %s1380_s16  ;;  %s1385_s30 = sshll.u32 %s1492_s24, 4  ;;  %s1386_s30 = int_to_ptr.vmem [resolvable:$false] %s1385_s30 }
  0x4d   : > { %s1387_s0 = scalar_lea.vmem %s1386_s30, 512  ;;  %p1388_p1 = scmp.lt.s32.totalorder %s1711_s9, %s1386_s30 }
  0x4e   : > { %p1383_p4 = pnand %p1381_p3, %p1367_p0  ;;  %p1389_p13 = scmp.lt.s32.totalorder %s1387_s0, %s1380_s16 }
  0x50   : > { %p1384_p7 = pneg %p1383_p4  ;;  %p1390_p5 = por %p1389_p13, %p1388_p1 }
  0x52   : > { %p1391_p9 = pnand %p1390_p5, %p1384_p7 }
  0x54   : > { %1394 = shalt.err (!%p1391_p9)
}
  0x55   : > { %s1493_s29 = smov 128   ;;  %s1494_s10 = smov 64  }
  0x56   : > { %s1495_s11 = smov 4   ;;  %277 = sbr.rel (%p1700_p8) target bundleno = 7701 (0x1e15), region = 40 }
  0x57   : > { %1214 = dma.hbm_to_vmem [thread:$0]  (!%p1665_p2), %s1709_s8, 256, %s1711_s9, %s1713_s17, %s1493_s29, %s1494_s10, %s1495_s11  }
  0x58   : > { %s279_s13 = sand.u32 (!%p1700_p8), 1, %s1465_s25   ;;  %p2126_p0 = scmp.ne.s32.totalorder (!%p1700_p8), %s2118_s15, 0 }
  0x59   : > { %s1744_s21 = sshll.u32 (!%p1700_p8), %s279_s13, 3  ;;  %s280_s16 = scalar_lea.sflag (!%p1700_p8), [#allocation5], %s279_s13 }
  0x5a   : > { %s283_s24 = scalar_lea.vmem (!%p1700_p8), [#allocation4], %s1744_s21 }
  0x5d   : > { %1440 = dma.done.wait (%p2126_p0), %s280_s16, 128  }
  0x5e   : > { %1442 = vsyncadd (%p2126_p0), %s280_s16, 4294967168  ;;  %s288_s12 = sand.u32 1, %s1453_s22   ;;  %p2127_p2 = scmp.ne.s32.totalorder %s2119_s20, 0 }
  0x5f   : > { %s1180_s8 = sshll.u32 %s288_s12, 4  ;;  %s289_s9 = scalar_lea.sflag [#allocation7], %s288_s12 }
  0x60   : > { %s292_s14 = scalar_lea.vmem [#allocation6], %s1180_s8 }
  0x61   : > { %1444 = dma.done.wait (%p2127_p2), %s289_s9, 256  }
  0x62   : > { %1446 = vsyncadd (%p2127_p2), %s289_s9, 4294967040  ;;  %p332_p8 = scmp.lt.s32.totalorder %s1473_s27, 1  ;;  %p335_p6 = scmp.lt.s32.totalorder %s1477_s28, 1 }
  0x63   : > { %p1183_p10 = scmp.ne.s32.totalorder %s1473_s27, 0 }
  0x64   : > { %s333_s17 = scalar_select %p332_p8, %s1473_s27, 1 }
  0x65   : > { %s2148_s28 = smov (!%p335_p6, %s1477_s28), 1  ;;  %347 = sbr.rel (%p1183_p10) target bundleno = 108 (0x6c), region = 52 }
  0x66   : > { %s334_s0 = scalar_lea.vmem %s2097_s2, %s333_s17  ;;  %s1181_s29 = sshll.u32 %s2148_s28, 3  ;;  %vm348_vm0 = vcmask (!%p1183_p10), 64512   ;;  %v1496_v0 = vmov (!%p1183_p10), -inf   ;;  %v1497_v1 = vmov (!%p1183_p10), 0  }
  0x67   : > { %s1766_s13 = scalar_lea.vmem %s2100_s5, %s1181_s29  ;;  %s1771_s12 = scalar_lea.vmem %s2101_s6, %s1181_s29  ;;  %349 = vst.msk [vmem:[#allocation2] sm:$0xff] (!%p1183_p10), %vm348_vm0, %v1496_v0  ;;  %350 = vst.msk [vmem:[#allocation3] sm:$0xff] (!%p1183_p10), %vm348_vm0, %v1497_v1 }
  0x6c PF: > { %v1320_v2 = vld [vmem:[%s292_s14] sm:$0xff]   ;;  %v1498_v3 = vmov 0.0   ;;  %v1321_v4 = vld [vmem:[%s292_s14 + $0x8] sm:$0xff]   ;;  %vm1499_vm1 = vmmov 0   ;;  %vm376_vm2 = vcmask 261120   ;;  %v420_v13 = vlaneseq  ;;  %s1500_s28 = smov 8  }
  0x6d   : > { %1196 = vmatprep.subr.bf16.mxu0 %v1498_v3  ;;  %1200 = vmatprep.mubr.msk.bf16.mxu0 %vm1499_vm1, %v1498_v3  ;;  %v351_v5 = vld [vmem:[%s283_s24] sm:$0xff]  ;;  %v1184_v7 = vld [vmem:[%s334_s0] ss:$0 sm:$0xff]  ;;  %s1188_s21 = sshll.u32 %s1473_s27, 7  ;;  %p1189_p11 = scmp.ne.s32.totalorder %s1473_s27, 1 }
  0x6e   : > { %1197 = vmatpush3.bf16.msra.mxu0 %v1320_v2  ;;  %v352_v6 = vpack.c.bf16 %v351_v5, %v351_v5  ;;  %v1777_v14 = vand.u32 127, %v420_v13 }
  0x6f   : > { %1198 = vmatprep.subr.bf16.mxu0 %v1498_v3 }
  0x70   : > { %vm441_vm8 = vcmp.eq.s32.totalorder %v1777_v14, 0  ;;  %vm464_vm9 = vcmp.eq.s32.totalorder %v1777_v14, 1  ;;  %vm487_vm13 = vcmp.eq.s32.totalorder %v1777_v14, 2  ;;  %vm510_vm1 = vcmp.eq.s32.totalorder %v1777_v14, 3 }
  0x72   : > { %1199 = vmatpush3.bf16.msra.mxu0 %v1321_v4 }
  0x75   : > { %1201 = vmatmul.mubr.msk.bf16.vlgmr.msra.gmra.mrb[0].mxu0 %vm376_vm2, %v352_v6 }
 0x148   : > { %v414_v8 = vpop.f32.mrb[0].mxu0 }
 0x149   : > { %v415_v9 = vadd.f32 %v1184_v7, %v414_v8  ;;  %v1202_v10 = vpop.f32.mrb[1].mxu0 }
 0x14a   : > { %v417_v11 = vpop.f32.mrb[2].mxu0 }
 0x14b   : > { %422 = vmax.xlane.f32.xlu0 %v415_v9  ;;  %v1203_v12 = vpop.f32.mrb[3].mxu0 }
 0x1d8   : > { %v1779_v15 = vpop.xlane.xlu0 %422 }
 0x1d9   : > { %vm424_vm3 = vcmp.eq.f32.partialorder %v415_v9, %v1779_v15 }
 0x1da   : > { %v425_v16 = vsel %vm424_vm3, %v1777_v14, 128 }
 0x1db   : > { %v427_v17 = vshra.s32 %v425_v16, 16  ;;  %v426_v19 = vand.u32 65535, %v425_v16 }
 0x1dd   : > { %v429_v18 = vcvt.s32.f32 %v427_v17  ;;  %v428_v21 = vcvt.s32.f32 %v426_v19 }
 0x1df   : > { %430 = vmin.xlane.f32.xlu0 %v429_v18 }
 0x26c   : > { %v431_v20 = vpop.xlane.xlu0 %430 }
 0x26d   : > { %vm432_vm4 = vcmp.eq.f32.partialorder %v429_v18, %v431_v20  ;;  %v437_v23 = vcvt.f32.s32 %v431_v20 }
 0x26e   : > { %v433_v22 = vsel %vm432_vm4, %v428_v21, inf }
 0x26f   : > { %434 = vmin.xlane.f32.xlu1 %v433_v22  ;;  %v438_v25 = vshll.u32 %v437_v23, 16 }
 0x2fc   : > { %v435_v24 = vpop.xlane.xlu1 %434 }
 0x2fd   : > { %v436_v26 = vcvt.f32.s32 %v435_v24 }
 0x2ff   : > { %v439_v27 = vadd.s32 %v438_v25, %v436_v26 }
 0x301   : > { %vm440_vm5 = vcmp.eq.s32.totalorder %v1777_v14, %v439_v27  ;;  %v443_v42 = vsel %vm441_vm8, %v439_v27, 0 }
 0x302   : > { %v444_v28 = vsel %vm440_vm5, -inf, %v415_v9  ;;  %vm533_vm5 = vcmp.eq.s32.totalorder %v1777_v14, 4 }
 0x303   : > { %445 = vmax.xlane.f32.xlu1 %v444_v28 }
 0x390   : > { %v1784_v29 = vpop.xlane.xlu1 %445 }
 0x391   : > { %vm447_vm6 = vcmp.eq.f32.partialorder %v444_v28, %v1784_v29 }
 0x392   : > { %v448_v30 = vsel %vm447_vm6, %v1777_v14, 128 }
 0x393   : > { %v450_v31 = vshra.s32 %v448_v30, 16  ;;  %v449_v33 = vand.u32 65535, %v448_v30 }
 0x395   : > { %v452_v32 = vcvt.s32.f32 %v450_v31  ;;  %v451_v35 = vcvt.s32.f32 %v449_v33 }
 0x397   : > { %453 = vmin.xlane.f32.xlu0 %v452_v32 }
 0x424   : > { %v454_v34 = vpop.xlane.xlu0 %453 }
 0x425   : > { %vm455_vm7 = vcmp.eq.f32.partialorder %v452_v32, %v454_v34  ;;  %v460_v37 = vcvt.f32.s32 %v454_v34 }
 0x426   : > { %v456_v36 = vsel %vm455_vm7, %v451_v35, inf }
 0x427   : > { %457 = vmin.xlane.f32.xlu1 %v456_v36  ;;  %v461_v39 = vshll.u32 %v460_v37, 16 }
 0x4b4   : > { %v458_v38 = vpop.xlane.xlu1 %457 }
 0x4b5   : > { %v459_v40 = vcvt.f32.s32 %v458_v38 }
 0x4b7   : > { %v462_v41 = vadd.s32 %v461_v39, %v459_v40 }
 0x4b9   : > { %v466_v43 = vsel %vm464_vm9, %v462_v41, %v443_v42  ;;  %vm463_vm10 = vcmp.eq.s32.totalorder %v1777_v14, %v462_v41 }
 0x4ba   : > { %v467_v44 = vsel %vm463_vm10, -inf, %v444_v28 }
 0x4bb   : > { %468 = vmax.xlane.f32.xlu0 %v467_v44 }
 0x548   : > { %v1795_v45 = vpop.xlane.xlu0 %468 }
 0x549   : > { %vm470_vm11 = vcmp.eq.f32.partialorder %v467_v44, %v1795_v45 }
 0x54a   : > { %v471_v46 = vsel %vm470_vm11, %v1777_v14, 128  ;;  %vm556_vm11 = vcmp.eq.s32.totalorder %v1777_v14, 5 }
 0x54b   : > { %v473_v47 = vshra.s32 %v471_v46, 16  ;;  %v472_v49 = vand.u32 65535, %v471_v46 }
 0x54d   : > { %v475_v48 = vcvt.s32.f32 %v473_v47  ;;  %v474_v51 = vcvt.s32.f32 %v472_v49 }
 0x54f   : > { %476 = vmin.xlane.f32.xlu1 %v475_v48 }
 0x5dc   : > { %v477_v50 = vpop.xlane.xlu1 %476 }
 0x5dd   : > { %vm478_vm12 = vcmp.eq.f32.partialorder %v475_v48, %v477_v50  ;;  %v483_v53 = vcvt.f32.s32 %v477_v50 }
 0x5de   : > { %v479_v52 = vsel %vm478_vm12, %v474_v51, inf }
 0x5df   : > { %480 = vmin.xlane.f32.xlu0 %v479_v52  ;;  %v484_v55 = vshll.u32 %v483_v53, 16 }
 0x66c   : > { %v481_v54 = vpop.xlane.xlu0 %480 }
 0x66d   : > { %v482_v56 = vcvt.f32.s32 %v481_v54 }
 0x66f   : > { %v485_v57 = vadd.s32 %v484_v55, %v482_v56 }
 0x671   : > { %v489_v58 = vsel %vm487_vm13, %v485_v57, %v466_v43  ;;  %vm486_vm14 = vcmp.eq.s32.totalorder %v1777_v14, %v485_v57 }
 0x672   : > { %v490_v59 = vsel %vm486_vm14, -inf, %v467_v44 }
 0x673   : > { %491 = vmax.xlane.f32.xlu1 %v490_v59 }
 0x700   : > { %v1803_v60 = vpop.xlane.xlu1 %491 }
 0x701   : > { %vm493_vm15 = vcmp.eq.f32.partialorder %v490_v59, %v1803_v60 }
 0x702   : > { %v494_v61 = vsel %vm493_vm15, %v1777_v14, 128 }
 0x703   : > { %v496_v62 = vshra.s32 %v494_v61, 16  ;;  %v495_v0 = vand.u32 65535, %v494_v61 }
 0x705   : > { %v498_v63 = vcvt.s32.f32 %v496_v62  ;;  %v497_v2 = vcvt.s32.f32 %v495_v0  ;;  %v442_v62 = vsel %vm441_vm8, %v1779_v15, 0.0 }
 0x707   : > { %499 = vmin.xlane.f32.xlu0 %v498_v63 }
 0x794   : > { %v500_v1 = vpop.xlane.xlu0 %499 }
 0x795   : > { %vm501_vm0 = vcmp.eq.f32.partialorder %v498_v63, %v500_v1  ;;  %v506_v4 = vcvt.f32.s32 %v500_v1  ;;  %v465_v63 = vsel %vm464_vm9, %v1784_v29, %v442_v62 }
 0x796   : > { %v502_v3 = vsel %vm501_vm0, %v497_v2, inf  ;;  %vm579_vm0 = vcmp.eq.s32.totalorder %v1777_v14, 6  ;;  %v488_v0 = vsel %vm487_vm13, %v1795_v45, %v465_v63 }
 0x797   : > { %503 = vmin.xlane.f32.xlu1 %v502_v3  ;;  %v507_v6 = vshll.u32 %v506_v4, 16  ;;  %v511_v1 = vsel %vm510_vm1, %v1803_v60, %v488_v0  ;;  %v607_v60 = vld [vmem:[#allocation2] sm:$0xff] }
 0x824   : > { %v504_v5 = vpop.xlane.xlu1 %503 }
 0x825   : > { %v505_v7 = vcvt.f32.s32 %v504_v5 }
 0x827   : > { %v508_v8 = vadd.s32 %v507_v6, %v505_v7 }
 0x829   : > { %v512_v9 = vsel %vm510_vm1, %v508_v8, %v489_v58  ;;  %vm509_vm2 = vcmp.eq.s32.totalorder %v1777_v14, %v508_v8 }
 0x82a   : > { %v513_v10 = vsel %vm509_vm2, -inf, %v490_v59 }
 0x82b   : > { %514 = vmax.xlane.f32.xlu0 %v513_v10 }
 0x8b8   : > { %v1811_v11 = vpop.xlane.xlu0 %514 }
 0x8b9   : > { %vm516_vm3 = vcmp.eq.f32.partialorder %v513_v10, %v1811_v11  ;;  %v534_v2 = vsel %vm533_vm5, %v1811_v11, %v511_v1 }
 0x8ba   : > { %v517_v12 = vsel %vm516_vm3, %v1777_v14, 128  ;;  %vm601_vm3 = vcmp.eq.s32.totalorder %v1777_v14, 7 }
 0x8bb   : > { %v519_v16 = vshra.s32 %v517_v12, 16  ;;  %v518_v18 = vand.u32 65535, %v517_v12 }
 0x8bd   : > { %v521_v17 = vcvt.s32.f32 %v519_v16  ;;  %v520_v20 = vcvt.s32.f32 %v518_v18 }
 0x8bf   : > { %522 = vmin.xlane.f32.xlu1 %v521_v17 }
 0x94c   : > { %v523_v19 = vpop.xlane.xlu1 %522 }
 0x94d   : > { %vm524_vm4 = vcmp.eq.f32.partialorder %v521_v17, %v523_v19  ;;  %v529_v22 = vcvt.f32.s32 %v523_v19 }
 0x94e   : > { %v525_v21 = vsel %vm524_vm4, %v520_v20, inf  ;;  %vm612_vm4 = vcmask 64512  }
 0x94f   : > { %526 = vmin.xlane.f32.xlu0 %v525_v21  ;;  %v530_v24 = vshll.u32 %v529_v22, 16 }
 0x9dc   : > { %v527_v23 = vpop.xlane.xlu0 %526 }
 0x9dd   : > { %v528_v25 = vcvt.f32.s32 %v527_v23 }
 0x9df   : > { %v531_v26 = vadd.s32 %v530_v24, %v528_v25 }
 0x9e1   : > { %v535_v27 = vsel %vm533_vm5, %v531_v26, %v512_v9  ;;  %vm532_vm6 = vcmp.eq.s32.totalorder %v1777_v14, %v531_v26 }
 0x9e2   : > { %v536_v28 = vsel %vm532_vm6, -inf, %v513_v10  ;;  %vm618_vm6 = vcmask 130048  }
 0x9e3   : > { %537 = vmax.xlane.f32.xlu1 %v536_v28 }
 0xa70   : > { %v538_v30 = vpop.xlane.xlu1 %537 }
 0xa71   : > { %vm539_vm7 = vcmp.eq.f32.partialorder %v536_v28, %v538_v30  ;;  %v557_v15 = vsel %vm556_vm11, %v538_v30, %v534_v2 }
 0xa72   : > { %v540_v31 = vsel %vm539_vm7, %v1777_v14, 128 }
 0xa73   : > { %v542_v32 = vshra.s32 %v540_v31, 16  ;;  %v541_v34 = vand.u32 65535, %v540_v31 }
 0xa75   : > { %v544_v33 = vcvt.s32.f32 %v542_v32  ;;  %v543_v36 = vcvt.s32.f32 %v541_v34 }
 0xa77   : > { %545 = vmin.xlane.f32.xlu0 %v544_v33 }
 0xb04   : > { %v546_v35 = vpop.xlane.xlu0 %545 }
 0xb05   : > { %vm547_vm10 = vcmp.eq.f32.partialorder %v544_v33, %v546_v35  ;;  %v552_v38 = vcvt.f32.s32 %v546_v35 }
 0xb06   : > { %v548_v37 = vsel %vm547_vm10, %v543_v36, inf }
 0xb07   : > { %549 = vmin.xlane.f32.xlu1 %v548_v37  ;;  %v553_v40 = vshll.u32 %v552_v38, 16 }
 0xb94   : > { %v550_v39 = vpop.xlane.xlu1 %549 }
 0xb95   : > { %v551_v41 = vcvt.f32.s32 %v550_v39 }
 0xb97   : > { %v554_v42 = vadd.s32 %v553_v40, %v551_v41 }
 0xb99   : > { %v558_v43 = vsel %vm556_vm11, %v554_v42, %v535_v27  ;;  %vm555_vm12 = vcmp.eq.s32.totalorder %v1777_v14, %v554_v42 }
 0xb9a   : > { %v559_v44 = vsel %vm555_vm12, -inf, %v536_v28 }
 0xb9b   : > { %560 = vmax.xlane.f32.xlu0 %v559_v44 }
 0xc28   : > { %v561_v46 = vpop.xlane.xlu0 %560 }
 0xc29   : > { %vm562_vm14 = vcmp.eq.f32.partialorder %v559_v44, %v561_v46  ;;  %v580_v29 = vsel %vm579_vm0, %v561_v46, %v557_v15 }
 0xc2a   : > { %v563_v47 = vsel %vm562_vm14, %v1777_v14, 128 }
 0xc2b   : > { %v565_v48 = vshra.s32 %v563_v47, 16  ;;  %v564_v50 = vand.u32 65535, %v563_v47 }
 0xc2d   : > { %v567_v49 = vcvt.s32.f32 %v565_v48  ;;  %v566_v52 = vcvt.s32.f32 %v564_v50 }
 0xc2f   : > { %568 = vmin.xlane.f32.xlu1 %v567_v49 }
 0xcbc   : > { %v569_v51 = vpop.xlane.xlu1 %568 }
 0xcbd   : > { %vm570_vm15 = vcmp.eq.f32.partialorder %v567_v49, %v569_v51  ;;  %v575_v54 = vcvt.f32.s32 %v569_v51 }
 0xcbe   : > { %v571_v53 = vsel %vm570_vm15, %v566_v52, inf }
 0xcbf   : > { %572 = vmin.xlane.f32.xlu0 %v571_v53  ;;  %v576_v56 = vshll.u32 %v575_v54, 16 }
 0xd4c   : > { %v573_v55 = vpop.xlane.xlu0 %572 }
 0xd4d   : > { %v574_v57 = vcvt.f32.s32 %v573_v55 }
 0xd4f   : > { %v577_v58 = vadd.s32 %v576_v56, %v574_v57 }
 0xd51   : > { %v1828_v59 = vsel %vm579_vm0, %v577_v58, %v558_v43  ;;  %vm578_vm2 = vcmp.eq.s32.totalorder %v1777_v14, %v577_v58 }
 0xd52   : > { %v1831_v61 = vsel %vm578_vm2, -inf, %v559_v44 }
 0xd53   : > { %583 = vmax.xlane.f32.xlu1 %v1831_v61 }
 0xde0   : > { %v1854_v3 = vpop.xlane.xlu1 %583 }
 0xde1   : > { %v602_v45 = vsel %vm601_vm3, %v1854_v3, %v580_v29 }
 0xde2   : > { %609 = vrot.lane.b32.xlu0 %v602_v45, %s1500_s28 }
 0xe54   : > { %v610_v4 = vpop.permute.xlu0 %609 }
 0xe55   : > { %v613_v5 = vsel %vm612_vm4, %v607_v60, %v610_v4 }
 0xe56   : > { %v619_v6 = vsel %vm618_vm6, %v613_v5, -inf }
 0xe57   : > { %620 = vmax.xlane.f32.xlu1 %v619_v6 }
 0xee4   : > { %v1862_v7 = vpop.xlane.xlu1 %620 }
 0xee5   : > { %vm622_vm7 = vcmp.eq.f32.partialorder %v613_v5, %v1862_v7 }
 0xee6   : > { %v623_v8 = vsel %vm622_vm7, %v1777_v14, 16 }
 0xee7   : > { %v624_v9 = vsel %vm618_vm6, %v623_v8, 2147483647 }
 0xee8   : > { %v626_v10 = vshra.s32 %v624_v9, 16  ;;  %v625_v12 = vand.u32 65535, %v624_v9 }
 0xeea   : > { %v628_v11 = vcvt.s32.f32 %v626_v10  ;;  %v627_v17 = vcvt.s32.f32 %v625_v12 }
 0xeec   : > { %629 = vmin.xlane.f32.xlu1 %v628_v11 }
 0xf79   : > { %v630_v16 = vpop.xlane.xlu1 %629 }
 0xf7a   : > { %vm631_vm10 = vcmp.eq.f32.partialorder %v628_v11, %v630_v16  ;;  %v636_v19 = vcvt.f32.s32 %v630_v16 }
 0xf7b   : > { %v632_v18 = vsel %vm631_vm10, %v627_v17, inf }
 0xf7c   : > { %633 = vmin.xlane.f32.xlu1 %v632_v18  ;;  %v637_v21 = vshll.u32 %v636_v19, 16 }
0x1009   : > { %v634_v20 = vpop.xlane.xlu1 %633 }
0x100a   : > { %v635_v22 = vcvt.f32.s32 %v634_v20 }
0x100c   : > { %v1867_v23 = vadd.s32 %v637_v21, %v635_v22 }
0x100e   : > { %vm639_vm12 = vcmp.eq.s32.totalorder %v1777_v14, %v1867_v23 }
0x100f   : > { %v656_v24 = vsel %vm639_vm12, -inf, %v613_v5 }
0x1010   : > { %v657_v25 = vsel %vm618_vm6, %v656_v24, -inf }
0x1011   : > { %658 = vmax.xlane.f32.xlu1 %v657_v25 }
0x109e   : > { %v1875_v26 = vpop.xlane.xlu1 %658 }
0x109f   : > { %vm660_vm14 = vcmp.eq.f32.partialorder %v656_v24, %v1875_v26 }
0x10a0   : > { %v661_v27 = vsel %vm660_vm14, %v1777_v14, 16 }
0x10a1   : > { %v662_v28 = vsel %vm618_vm6, %v661_v27, 2147483647 }
0x10a2   : > { %v664_v30 = vshra.s32 %v662_v28, 16  ;;  %v663_v32 = vand.u32 65535, %v662_v28 }
0x10a4   : > { %v666_v31 = vcvt.s32.f32 %v664_v30  ;;  %v665_v34 = vcvt.s32.f32 %v663_v32 }
0x10a6   : > { %667 = vmin.xlane.f32.xlu1 %v666_v31 }
0x1133   : > { %v668_v33 = vpop.xlane.xlu1 %667 }
0x1134   : > { %vm669_vm15 = vcmp.eq.f32.partialorder %v666_v31, %v668_v33  ;;  %v674_v36 = vcvt.f32.s32 %v668_v33 }
0x1135   : > { %v670_v35 = vsel %vm669_vm15, %v665_v34, inf }
0x1136   : > { %671 = vmin.xlane.f32.xlu1 %v670_v35  ;;  %v675_v38 = vshll.u32 %v674_v36, 16 }
0x11c3   : > { %v672_v37 = vpop.xlane.xlu1 %671 }
0x11c4   : > { %v673_v39 = vcvt.f32.s32 %v672_v37 }
0x11c6   : > { %v1880_v40 = vadd.s32 %v675_v38, %v673_v39 }
0x11c8   : > { %vm677_vm2 = vcmp.eq.s32.totalorder %v1777_v14, %v1880_v40 }
0x11c9   : > { %v694_v41 = vsel %vm677_vm2, -inf, %v656_v24 }
0x11ca   : > { %v695_v42 = vsel %vm618_vm6, %v694_v41, -inf }
0x11cb   : > { %696 = vmax.xlane.f32.xlu0 %v695_v42 }
0x1258   : > { %v1888_v43 = vpop.xlane.xlu0 %696 }
0x1259   : > { %vm698_vm7 = vcmp.eq.f32.partialorder %v694_v41, %v1888_v43 }
0x125a   : > { %v699_v44 = vsel %vm698_vm7, %v1777_v14, 16 }
0x125b   : > { %v700_v46 = vsel %vm618_vm6, %v699_v44, 2147483647 }
0x125c   : > { %v702_v47 = vshra.s32 %v700_v46, 16  ;;  %v701_v49 = vand.u32 65535, %v700_v46 }
0x125e   : > { %v704_v48 = vcvt.s32.f32 %v702_v47  ;;  %v703_v51 = vcvt.s32.f32 %v701_v49 }
0x1260   : > { %705 = vmin.xlane.f32.xlu1 %v704_v48 }
0x12ed   : > { %v706_v50 = vpop.xlane.xlu1 %705 }
0x12ee   : > { %vm707_vm10 = vcmp.eq.f32.partialorder %v704_v48, %v706_v50  ;;  %v712_v53 = vcvt.f32.s32 %v706_v50 }
0x12ef   : > { %v708_v52 = vsel %vm707_vm10, %v703_v51, inf }
0x12f0   : > { %709 = vmin.xlane.f32.xlu1 %v708_v52  ;;  %v713_v55 = vshll.u32 %v712_v53, 16 }
0x137d   : > { %v710_v54 = vpop.xlane.xlu1 %709 }
0x137e   : > { %v711_v56 = vcvt.f32.s32 %v710_v54 }
0x1380   : > { %v1893_v57 = vadd.s32 %v713_v55, %v711_v56 }
0x1382   : > { %vm2108_vm14 = vcmp.eq.s32.totalorder %v1777_v14, %v1893_v57 }
0x1383   : > { %v732_v58 = vsel %vm2108_vm14, -inf, %v694_v41 }
0x1384   : > { %v733_v62 = vsel %vm618_vm6, %v732_v58, -inf }
0x1385   : > { %734 = vmax.xlane.f32.xlu1 %v733_v62 }
0x1412   : > { %v1901_v63 = vpop.xlane.xlu1 %734 }
0x1413   : > { %vm736_vm15 = vcmp.eq.f32.partialorder %v732_v58, %v1901_v63 }
0x1414   : > { %v737_v0 = vsel %vm736_vm15, %v1777_v14, 16 }
0x1415   : > { %v738_v1 = vsel %vm618_vm6, %v737_v0, 2147483647 }
0x1416   : > { %v740_v2 = vshra.s32 %v738_v1, 16  ;;  %v739_v29 = vand.u32 65535, %v738_v1 }
0x1418   : > { %v742_v15 = vcvt.s32.f32 %v740_v2  ;;  %v741_v60 = vcvt.s32.f32 %v739_v29 }
0x141a   : > { %743 = vmin.xlane.f32.xlu1 %v742_v15 }
0x14a7   : > { %v744_v45 = vpop.xlane.xlu1 %743 }
0x14a8   : > { %vm745_vm7 = vcmp.eq.f32.partialorder %v742_v15, %v744_v45  ;;  %v750_v5 = vcvt.f32.s32 %v744_v45 }
0x14a9   : > { %v746_v4 = vsel %vm745_vm7, %v741_v60, inf }
0x14aa   : > { %747 = vmin.xlane.f32.xlu1 %v746_v4  ;;  %v751_v8 = vshll.u32 %v750_v5, 16 }
0x1537   : > { %v748_v6 = vpop.xlane.xlu1 %747 }
0x1538   : > { %v749_v9 = vcvt.f32.s32 %v748_v6 }
0x153a   : > { %v1906_v10 = vadd.s32 %v751_v8, %v749_v9 }
0x153c   : > { %vm753_vm10 = vcmp.eq.s32.totalorder %v1777_v14, %v1906_v10 }
0x153d   : > { %v770_v11 = vsel %vm753_vm10, -inf, %v732_v58 }
0x153e   : > { %v771_v12 = vsel %vm618_vm6, %v770_v11, -inf }
0x153f   : > { %772 = vmax.xlane.f32.xlu1 %v771_v12 }
0x15cc   : > { %v1914_v16 = vpop.xlane.xlu1 %772 }
0x15cd   : > { %vm774_vm15 = vcmp.eq.f32.partialorder %v770_v11, %v1914_v16 }
0x15ce   : > { %v775_v17 = vsel %vm774_vm15, %v1777_v14, 16 }
0x15cf   : > { %v776_v18 = vsel %vm618_vm6, %v775_v17, 2147483647 }
0x15d0   : > { %v778_v19 = vshra.s32 %v776_v18, 16  ;;  %v777_v21 = vand.u32 65535, %v776_v18 }
0x15d2   : > { %v780_v20 = vcvt.s32.f32 %v778_v19  ;;  %v779_v24 = vcvt.s32.f32 %v777_v21  ;;  %v654_v19 = vsel %vm441_vm8, %v1862_v7, 0.0 }
0x15d4   : > { %781 = vmin.xlane.f32.xlu1 %v780_v20 }
0x1661   : > { %v782_v22 = vpop.xlane.xlu1 %781 }
0x1662   : > { %vm783_vm7 = vcmp.eq.f32.partialorder %v780_v20, %v782_v22  ;;  %v788_v27 = vcvt.f32.s32 %v782_v22  ;;  %v692_v20 = vsel %vm464_vm9, %v1875_v26, %v654_v19 }
0x1663   : > { %v784_v25 = vsel %vm783_vm7, %v779_v24, inf  ;;  %v730_v21 = vsel %vm487_vm13, %v1888_v43, %v692_v20 }
0x1664   : > { %785 = vmin.xlane.f32.xlu1 %v784_v25  ;;  %v789_v30 = vshll.u32 %v788_v27, 16  ;;  %v768_v24 = vsel %vm510_vm1, %v1901_v63, %v730_v21 }
0x1665   : > { %v806_v25 = vsel %vm533_vm5, %v1914_v16, %v768_v24  ;;  %v605_v16 = vstv %s1188_s21 }
0x16f1   : > { %v786_v28 = vpop.xlane.xlu1 %785 }
0x16f2   : > { %v787_v31 = vcvt.f32.s32 %v786_v28 }
0x16f4   : > { %v1919_v32 = vadd.s32 %v789_v30, %v787_v31 }
0x16f6   : > { %vm2109_vm15 = vcmp.eq.s32.totalorder %v1777_v14, %v1919_v32 }
0x16f7   : > { %v808_v33 = vsel %vm2109_vm15, -inf, %v770_v11 }
0x16f8   : > { %v809_v34 = vsel %vm618_vm6, %v808_v33, -inf }
0x16f9   : > { %810 = vmax.xlane.f32.xlu0 %v809_v34 }
0x1786   : > { %v811_v35 = vpop.xlane.xlu0 %810 }
0x1787   : > { %vm812_vm14 = vcmp.eq.f32.partialorder %v808_v33, %v811_v35  ;;  %v844_v7 = vsel %vm556_vm11, %v811_v35, %v806_v25 }
0x1788   : > { %v813_v36 = vsel %vm812_vm14, %v1777_v14, 16 }
0x1789   : > { %v814_v37 = vsel %vm618_vm6, %v813_v36, 2147483647 }
0x178a   : > { %v816_v38 = vshra.s32 %v814_v37, 16  ;;  %v815_v41 = vand.u32 65535, %v814_v37 }
0x178c   : > { %v818_v39 = vcvt.s32.f32 %v816_v38  ;;  %v817_v44 = vcvt.s32.f32 %v815_v41 }
0x178e   : > { %819 = vmin.xlane.f32.xlu1 %v818_v39 }
0x181b   : > { %v820_v42 = vpop.xlane.xlu1 %819 }
0x181c   : > { %vm821_vm7 = vcmp.eq.f32.partialorder %v818_v39, %v820_v42  ;;  %v826_v47 = vcvt.f32.s32 %v820_v42  ;;  %v614_v39 = vld [vmem:[#allocation3] sm:$0xff] }
0x181d   : > { %v822_v46 = vsel %vm821_vm7, %v817_v44, inf  ;;  %vm585_vm7 = vcmp.eq.f32.partialorder %v1831_v61, %v1854_v3 }
0x181e   : > { %823 = vmin.xlane.f32.xlu0 %v822_v46  ;;  %v827_v49 = vshll.u32 %v826_v47, 16  ;;  %v586_v1 = vsel %vm585_vm7, %v1777_v14, 128 }
0x181f   : > { %v588_v29 = vshra.s32 %v586_v1, 16  ;;  %v587_v6 = vand.u32 65535, %v586_v1 }
0x1821   : > { %v590_v60 = vcvt.s32.f32 %v588_v29  ;;  %v589_v61 = vcvt.s32.f32 %v587_v6 }
0x18ab   : > { %v824_v48 = vpop.xlane.xlu0 %823 }
0x18ac   : > { %v825_v50 = vcvt.f32.s32 %v824_v48 }
0x18ae   : > { %v1929_v51 = vadd.s32 %v827_v49, %v825_v50 }
0x18b0   : > { %vm2110_vm14 = vcmp.eq.s32.totalorder %v1777_v14, %v1929_v51 }
0x18b1   : > { %v846_v52 = vsel %vm2110_vm14, -inf, %v808_v33 }
0x18b2   : > { %v847_v53 = vsel %vm618_vm6, %v846_v52, -inf }
0x18b3   : > { %848 = vmax.xlane.f32.xlu1 %v847_v53 }
0x1940   : > { %v849_v54 = vpop.xlane.xlu1 %848 }
0x1941   : > { %vm850_vm15 = vcmp.eq.f32.partialorder %v846_v52, %v849_v54  ;;  %v882_v26 = vsel %vm579_vm0, %v849_v54, %v844_v7 }
0x1942   : > { %v851_v55 = vsel %vm850_vm15, %v1777_v14, 16 }
0x1943   : > { %v852_v56 = vsel %vm618_vm6, %v851_v55, 2147483647 }
0x1944   : > { %v854_v58 = vshra.s32 %v852_v56, 16  ;;  %v853_v0 = vand.u32 65535, %v852_v56 }
0x1946   : > { %v856_v62 = vcvt.s32.f32 %v854_v58  ;;  %v855_v15 = vcvt.s32.f32 %v853_v0 }
0x1948   : > { %857 = vmin.xlane.f32.xlu0 %v856_v62 }
0x19d5   : > { %v858_v2 = vpop.xlane.xlu0 %857 }
0x19d6   : > { %vm859_vm14 = vcmp.eq.f32.partialorder %v856_v62, %v858_v2  ;;  %v864_v4 = vcvt.f32.s32 %v858_v2 }
0x19d7   : > { %v860_v45 = vsel %vm859_vm14, %v855_v15, inf }
0x19d8   : > { %861 = vmin.xlane.f32.xlu1 %v860_v45  ;;  %v865_v8 = vshll.u32 %v864_v4, 16 }
0x19dc   : > { %591 = vmin.xlane.f32.xlu1 %v590_v60 }
0x1a65   : > { %v862_v5 = vpop.xlane.xlu1 %861 }
0x1a66   : > { %v863_v9 = vcvt.f32.s32 %v862_v5 }
0x1a68   : > { %v1942_v11 = vadd.s32 %v865_v8, %v863_v9 }
0x1a69   : > { %v592_v12 = vpop.xlane.xlu1 %591 }
0x1a6a   : > { %vm593_vm15 = vcmp.eq.f32.partialorder %v590_v60, %v592_v12  ;;  %vm867_vm7 = vcmp.eq.s32.totalorder %v1777_v14, %v1942_v11  ;;  %v598_v22 = vcvt.f32.s32 %v592_v12 }
0x1a6b   : > { %v594_v3 = vsel %vm593_vm15, %v589_v61, inf  ;;  %v884_v17 = vsel %vm867_vm7, -inf, %v846_v52  ;;  %vm2130_vm15 = vcmp.eq.s32.totalorder %v1777_v14, %v1929_v51 }
0x1a6c   : > { %595 = vmin.xlane.f32.xlu1 %v594_v3  ;;  %v885_v18 = vsel %vm618_vm6, %v884_v17, -inf  ;;  %v599_v28 = vshll.u32 %v598_v22, 16 }
0x1a6d   : > { %886 = vmax.xlane.f32.xlu0 %v885_v18 }
0x1af9   : > { %v596_v27 = vpop.xlane.xlu1 %595 }
0x1afa   : > { %v597_v30 = vcvt.f32.s32 %v596_v27  ;;  %v887_v43 = vpop.xlane.xlu0 %886 }
0x1afb   : > { %vm888_vm14 = vcmp.eq.f32.partialorder %v884_v17, %v887_v43  ;;  %v1972_v31 = vsel %vm601_vm3, %v887_v43, %v882_v26 }
0x1afc   : > { %v600_v63 = vadd.s32 %v599_v28, %v597_v30  ;;  %v889_v33 = vsel %vm888_vm14, %v1777_v14, 16  ;;  %922 = vst.msk [vmem:[#allocation2] sm:$0xff] %vm612_vm4, %v1972_v31 }
0x1afd   : > { %v890_v34 = vsel %vm618_vm6, %v889_v33, 2147483647 }
0x1afe   : > { %v603_v35 = vsel %vm601_vm3, %v600_v63, %v1828_v59  ;;  %v892_v36 = vshra.s32 %v890_v34, 16  ;;  %v891_v49 = vand.u32 65535, %v890_v34 }
0x1aff   : > { %v606_v37 = vadd.s32 %v605_v16, %v603_v35 }
0x1b00   : > { %v894_v38 = vcvt.s32.f32 %v892_v36  ;;  %v893_v53 = vcvt.s32.f32 %v891_v49 }
0x1b01   : > { %615 = vrot.lane.b32.xlu1 %v606_v37, %s1500_s28 }
0x1b02   : > { %895 = vmin.xlane.f32.xlu0 %v894_v38 }
0x1b73   : > { %v616_v41 = vpop.permute.xlu1 %615 }
0x1b74   : > { %v1983_v42 = vsel %vm612_vm4, %v614_v39, %v616_v41 }
0x1b75   : > { %v754_v44 = vsel %vm753_vm10, %v1983_v42, 0  ;;  %v640_v48 = vsel %vm639_vm12, %v1983_v42, 0  ;;  %v678_v52 = vsel %vm677_vm2, %v1983_v42, 0  ;;  %vm2128_vm12 = vcmp.eq.s32.totalorder %v1777_v14, %v1893_v57 }
0x1b76   : > { %v755_v46 = vsel %vm618_vm6, %v754_v44, 0  ;;  %v641_v50 = vsel %vm618_vm6, %v640_v48, 0  ;;  %v679_v56 = vsel %vm618_vm6, %v678_v52, 0  ;;  %v716_v23 = vsel %vm2128_vm12, %v1983_v42, 0 }
0x1b77   : > { %v757_v47 = vshrl.u32 %v755_v46, 16  ;;  %v643_v54 = vshrl.u32 %v641_v50, 16  ;;  %v681_v62 = vshrl.u32 %v679_v56, 16  ;;  %v642_v1 = vand.u32 65535, %v641_v50 }
0x1b78   : > { %v717_v40 = vsel %vm618_vm6, %v716_v23, 0  ;;  %v680_v45 = vand.u32 65535, %v679_v56  ;;  %vm2129_vm2 = vcmp.eq.s32.totalorder %v1777_v14, %v1919_v32  ;;  %v830_v9 = vsel %vm2130_vm15, %v1983_v42, 0 }
0x1b79   : > { %v759_v59 = vcvt.s32.f32 %v757_v47  ;;  %v645_v58 = vcvt.s32.f32 %v643_v54  ;;  %v683_v0 = vcvt.s32.f32 %v681_v62  ;;  %v644_v2 = vcvt.s32.f32 %v642_v1 }
0x1b7a   : > { %v719_v15 = vshrl.u32 %v717_v40, 16  ;;  %v792_v60 = vsel %vm2129_vm2, %v1983_v42, 0  ;;  %v682_v4 = vcvt.s32.f32 %v680_v45  ;;  %v718_v5 = vand.u32 65535, %v717_v40 }
0x1b7b   : > { %762 = vadd.xlane.f32.xlu1 %v759_v59  ;;  %v793_v57 = vsel %vm618_vm6, %v792_v60, 0  ;;  %v756_v61 = vand.u32 65535, %v755_v46  ;;  %v831_v3 = vsel %vm618_vm6, %v830_v9, 0  ;;  %v868_v18 = vsel %vm867_vm7, %v1983_v42, 0 }
0x1b7c   : > { %v721_v29 = vcvt.s32.f32 %v719_v15  ;;  %v720_v6 = vcvt.s32.f32 %v718_v5  ;;  %v795_v8 = vshrl.u32 %v793_v57, 16  ;;  %v833_v17 = vshrl.u32 %v831_v3, 16 }
0x1b7d   : > { %v758_v32 = vcvt.s32.f32 %v756_v61  ;;  %v794_v20 = vand.u32 65535, %v793_v57  ;;  %v869_v21 = vsel %vm618_vm6, %v868_v18, 0  ;;  %v832_v25 = vand.u32 65535, %v831_v3 }
0x1b7e   : > { %v797_v12 = vcvt.s32.f32 %v795_v8  ;;  %v835_v19 = vcvt.s32.f32 %v833_v17  ;;  %v871_v22 = vshrl.u32 %v869_v21, 16  ;;  %v870_v36 = vand.u32 65535, %v869_v21 }
0x1b7f   : > { %v796_v51 = vcvt.s32.f32 %v794_v20  ;;  %v834_v7 = vcvt.s32.f32 %v832_v25 }
0x1b80   : > { %v873_v24 = vcvt.s32.f32 %v871_v22  ;;  %v872_v37 = vcvt.s32.f32 %v870_v36  ;;  %v1505_v36 = vmov (!%p1189_p11), 4  }
0x1b8f   : > { %v896_v10 = vpop.xlane.xlu0 %895 }
0x1b90   : > { %vm897_vm10 = vcmp.eq.f32.partialorder %v894_v38, %v896_v10  ;;  %v902_v27 = vcvt.f32.s32 %v896_v10 }
0x1b91   : > { %v898_v55 = vsel %vm897_vm10, %v893_v53, inf }
0x1b92   : > { %899 = vmin.xlane.f32.xlu0 %v898_v55  ;;  %v903_v28 = vshll.u32 %v902_v27, 16 }
0x1b96   : > { %648 = vadd.xlane.f32.xlu0 %v645_v58 }
0x1b9a   : > { %686 = vadd.xlane.f32.xlu0 %v683_v0 }
0x1b9e   : > { %646 = vadd.xlane.f32.xlu0 %v644_v2 }
0x1ba2   : > { %724 = vadd.xlane.f32.xlu0 %v721_v29 }
0x1ba6   : > { %684 = vadd.xlane.f32.xlu0 %v682_v4 }
0x1baa   : > { %722 = vadd.xlane.f32.xlu0 %v720_v6 }
0x1bae   : > { %800 = vadd.xlane.f32.xlu0 %v797_v12 }
0x1bb2   : > { %760 = vadd.xlane.f32.xlu0 %v758_v32 }
0x1bb6   : > { %838 = vadd.xlane.f32.xlu0 %v835_v19 }
0x1bba   : > { %798 = vadd.xlane.f32.xlu0 %v796_v51 }
0x1bbe   : > { %876 = vadd.xlane.f32.xlu0 %v873_v24 }
0x1bc2   : > { %836 = vadd.xlane.f32.xlu0 %v834_v7 }
0x1c08   : > { %v763_v52 = vpop.xlane.xlu1 %762 }
0x1c09   : > { %v765_v56 = vcvt.f32.s32 %v763_v52 }
0x1c0b   : > { %v766_v4 = vshll.u32 %v765_v56, 16 }
0x1c1f   : > { %v900_v26 = vpop.xlane.xlu0 %899 }
0x1c20   : > { %v901_v30 = vcvt.f32.s32 %v900_v26 }
0x1c22   : > { %v904_v43 = vadd.s32 %v903_v28, %v901_v30 }
0x1c23   : > { %v649_v38 = vpop.xlane.xlu0 %648 }
0x1c24   : > { %vm905_vm7 = vcmp.eq.s32.totalorder %v1777_v14, %v904_v43  ;;  %v651_v10 = vcvt.f32.s32 %v649_v38  ;;  %v1504_v14 = vmov (!%p1189_p11), 1   ;;  %v1507_v38 = vmov (!%p1189_p11), 6  }
0x1c25   : > { %v906_v11 = vsel %vm905_vm7, %v1983_v42, 0 }
0x1c26   : > { %v907_v63 = vsel %vm618_vm6, %v906_v11, 0  ;;  %v652_v23 = vshll.u32 %v651_v10, 16 }
0x1c27   : > { %v908_v33 = vand.u32 65535, %v907_v63  ;;  %v909_v16 = vshrl.u32 %v907_v63, 16  ;;  %v687_v39 = vpop.xlane.xlu0 %686 }
0x1c28   : > { %v689_v53 = vcvt.f32.s32 %v687_v39  ;;  %v1508_v39 = vmov (!%p1189_p11), 7  }
0x1c29   : > { %v910_v34 = vcvt.s32.f32 %v908_v33  ;;  %v911_v35 = vcvt.s32.f32 %v909_v16  ;;  %v1501_v16 = vmov (!%p1189_p11), 2  }
0x1c2a   : > { %v690_v40 = vshll.u32 %v689_v53, 16  ;;  %1324 = vset.pattern.permute.xlu1 (!%p1189_p11), %v1501_v16 }
0x1c2b   : > { %912 = vadd.xlane.f32.xlu1 %v910_v34  ;;  %914 = vadd.xlane.f32.xlu0 %v911_v35  ;;  %v647_v41 = vpop.xlane.xlu0 %646  ;;  %v1502_v34 = vmov (!%p1189_p11), 0   ;;  %v1503_v35 = vmov (!%p1189_p11), 3  }
0x1c2c   : > { %v650_v54 = vcvt.f32.s32 %v647_v41  ;;  %1322 = vset.pattern.permute.xlu0 (!%p1189_p11), %v1502_v34  ;;  %v943_v41 = vshrl.u32 (!%p1189_p11), %v420_v13, 7 }
0x1c2e   : > { %v653_v29 = vadd.s32 %v652_v23, %v650_v54  ;;  %v974_v10 = vsub.s32 (!%p1189_p11), 3, %v943_v41 }
0x1c2f   : > { %874 = vadd.xlane.f32.xlu0 %v872_v37  ;;  %v725_v44 = vpop.xlane.xlu0 %724  ;;  %v1506_v37 = vmov (!%p1189_p11), 5  }
0x1c30   : > { %v727_v55 = vcvt.f32.s32 %v725_v44  ;;  %v655_v17 = vsel %vm441_vm8, %v653_v29, 0  ;;  %v944_v44 = vsub.s32 (!%p1189_p11), 0, %v943_v41 }
0x1c32   : > { %v728_v45 = vshll.u32 %v727_v55, 16 }
0x1c33   : > { %v685_v46 = vpop.xlane.xlu0 %684 }
0x1c34   : > { %v688_v58 = vcvt.f32.s32 %v685_v46  ;;  %v928_v46 = vld [vmem:[%s2098_s3] sm:$0xff] (!%p1189_p11) }
0x1c36   : > { %v691_v5 = vadd.s32 %v690_v40, %v688_v58  ;;  %v994_v58 = vsub.s32 (!%p1189_p11), 5, %v943_v41 }
0x1c37   : > { %v723_v47 = vpop.xlane.xlu0 %722 }
0x1c38   : > { %v726_v0 = vcvt.f32.s32 %v723_v47  ;;  %v693_v20 = vsel %vm464_vm9, %v691_v5, %v655_v17  ;;  %v945_v47 = vrot.slane (!%p1189_p11), %v928_v46, %v944_v44 }
0x1c3a   : > { %v729_v8 = vadd.s32 %v728_v45, %v726_v0 }
0x1c3b   : > { %v801_v59 = vpop.xlane.xlu0 %800 }
0x1c3c   : > { %v803_v1 = vcvt.f32.s32 %v801_v59  ;;  %v731_v24 = vsel %vm487_vm13, %v729_v8, %v693_v20  ;;  %959 = vperm.xlu1 (!%p1189_p11), %1324, %v1972_v31   ;;  %v954_v59 = vsub.s32 (!%p1189_p11), 1, %v943_v41 }
0x1c3e   : > { %v804_v9 = vshll.u32 %v803_v1, 16  ;;  %v955_v53 = vrot.slane (!%p1189_p11), %v928_v46, %v954_v59 }
0x1c3f   : > { %v761_v48 = vpop.xlane.xlu0 %760 }
0x1c40   : > { %v764_v2 = vcvt.f32.s32 %v761_v48  ;;  %1325 = vset.pattern.permute.xlu1 (!%p1189_p11), %v1503_v35 }
0x1c41   : > { %969 = vperm.xlu1 (!%p1189_p11), %1325, %v1972_v31  }
0x1c42   : > { %v767_v3 = vadd.s32 %v766_v4, %v764_v2  ;;  %v995_v2 = vrot.slane (!%p1189_p11), %v928_v46, %v994_v58 }
0x1c43   : > { %v839_v42 = vpop.xlane.xlu0 %838 }
0x1c44   : > { %v841_v15 = vcvt.f32.s32 %v839_v42  ;;  %v769_v27 = vsel %vm510_vm1, %v767_v3, %v731_v24  ;;  %v964_v42 = vsub.s32 (!%p1189_p11), 2, %v943_v41 }
0x1c45   : > { %939 = vperm.xlu0 (!%p1189_p11), %1322, %v1972_v31   ;;  %1326 = vset.pattern.permute.xlu1 (!%p1189_p11), %v1505_v36 }
0x1c46   : > { %v842_v32 = vshll.u32 %v841_v15, 16  ;;  %979 = vperm.xlu1 (!%p1189_p11), %1326, %v1972_v31   ;;  %v965_v54 = vrot.slane (!%p1189_p11), %v928_v46, %v964_v42  ;;  %v1004_v15 = vsub.s32 (!%p1189_p11), 6, %v943_v41 }
0x1c47   : > { %v799_v49 = vpop.xlane.xlu0 %798 }
0x1c48   : > { %v802_v60 = vcvt.f32.s32 %v799_v49  ;;  %v1005_v8 = vrot.slane (!%p1189_p11), %v928_v46, %v1004_v15 }
0x1c49   : > { %1323 = vset.pattern.permute.xlu0 (!%p1189_p11), %v1504_v14 }
0x1c4a   : > { %v805_v18 = vadd.s32 %v804_v9, %v802_v60  ;;  %949 = vperm.xlu0 (!%p1189_p11), %1323, %v1972_v31   ;;  %1328 = vset.pattern.permute.xlu1 (!%p1189_p11), %v1507_v38  ;;  %v1014_v9 = vsub.s32 (!%p1189_p11), 7, %v943_v41 }
0x1c4b   : > { %v877_v50 = vpop.xlane.xlu0 %876  ;;  %999 = vperm.xlu1 (!%p1189_p11), %1328, %v1972_v31  }
0x1c4c   : > { %v879_v12 = vcvt.f32.s32 %v877_v50  ;;  %v807_v28 = vsel %vm533_vm5, %v805_v18, %v769_v27  ;;  %v1190_v50 = vld [vmem:[%s2099_s4] ss:$0 sm:$0xff] (!%p1189_p11)  ;;  %v1015_v17 = vrot.slane (!%p1189_p11), %v928_v46, %v1014_v9 }
0x1c4e   : > { %v880_v25 = vshll.u32 %v879_v12, 16  ;;  %1327 = vset.pattern.permute.xlu0 (!%p1189_p11), %v1506_v37 }
0x1c4f   : > { %v837_v62 = vpop.xlane.xlu0 %836  ;;  %989 = vperm.xlu0 (!%p1189_p11), %1327, %v1972_v31   ;;  %1329 = vset.pattern.permute.xlu1 (!%p1189_p11), %v1508_v39 }
0x1c50   : > { %v840_v57 = vcvt.f32.s32 %v837_v62  ;;  %1009 = vperm.xlu1 (!%p1189_p11), %1329, %v1972_v31   ;;  %v984_v31 = vsub.s32 (!%p1189_p11), 4, %v943_v41  ;;  %v975_v62 = vrot.slane (!%p1189_p11), %v928_v46, %v974_v10 }
0x1c52   : > { %v843_v21 = vadd.s32 %v842_v32, %v840_v57  ;;  %v985_v0 = vrot.slane (!%p1189_p11), %v928_v46, %v984_v31 }
0x1c53   : > { %1330 = vset.pattern.permute.xlu0 (!%p1189_p11), %v1508_v39 }
0x1c54   : > { %v845_v43 = vsel %vm556_vm11, %v843_v21, %v807_v28 }
0x1cb8   : > { %v915_v6 = vpop.xlane.xlu0 %914  ;;  %v913_v19 = vpop.xlane.xlu1 %912 }
0x1cb9   : > { %v917_v61 = vcvt.f32.s32 %v915_v6  ;;  %v916_v26 = vcvt.f32.s32 %v913_v19 }
0x1cbb   : > { %v918_v51 = vshll.u32 %v917_v61, 16 }
0x1cbc   : > { %v875_v22 = vpop.xlane.xlu0 %874  ;;  %v960_v48 = vpop.permute.xlu1 (!%p1189_p11), %959 }
0x1cbd   : > { %v878_v7 = vcvt.f32.s32 %v875_v22  ;;  %v919_v11 = vadd.s32 %v918_v51, %v916_v26  ;;  %927 = sbr.rel (%p1189_p11) target bundleno = 7701 (0x1e15), region = 56  ;;  %v966_v1 = vmul.f32 (!%p1189_p11), %v965_v54, %v960_v48 }
0x1cbf   : > { %v881_v30 = vadd.s32 %v880_v25, %v878_v7 }
0x1cc0   : > { %v970_v55 = vpop.permute.xlu1 (!%p1189_p11), %969 }
0x1cc1   : > { %v883_v63 = vsel %vm579_vm0, %v881_v30, %v845_v43  ;;  %v976_v29 = vmul.f32 (!%p1189_p11), %v975_v62, %v970_v55 }
0x1cc2   : > { %v921_v33 = vsel %vm601_vm3, %v919_v11, %v883_v63 }
0x1cc3   : > { %923 = vst.msk [vmem:[#allocation3] sm:$0xff] %vm612_vm4, %v921_v33  ;;  %1030 = vst.msk [vmem:[%s1771_s12] sm:$0xff] (!%p1189_p11), %vm612_vm4, %v921_v33 }
0x1cc4   : > { %v940_v49 = vpop.permute.xlu0 %939 }
0x1cc5   : > { %v946_v52 = vmul.f32 %v945_v47, %v940_v49  ;;  %v980_v60 = vpop.permute.xlu1 %979 }
0x1cc6   : > { %v986_v5 = vmul.f32 %v985_v0, %v980_v60 }
0x1cc7   : > { %v947_v13 = vadd.f32 %v1190_v50, %v946_v52 }
0x1cc9   : > { %v950_v56 = vpop.permute.xlu0 %949 }
0x1cca   : > { %v956_v23 = vmul.f32 %v955_v53, %v950_v56  ;;  %v1000_v61 = vpop.permute.xlu1 %999 }
0x1ccb   : > { %v1006_v32 = vmul.f32 %v1005_v8, %v1000_v61 }
0x1ccc   : > { %v957_v40 = vadd.f32 %v956_v23, %v947_v13 }
0x1cce   : > { %v967_v45 = vadd.f32 %v966_v1, %v957_v40  ;;  %v990_v4 = vpop.permute.xlu0 %989 }
0x1ccf   : > { %v996_v6 = vmul.f32 %v995_v2, %v990_v4  ;;  %v1010_v18 = vpop.permute.xlu1 %1009 }
0x1cd0   : > { %v977_v57 = vadd.f32 %v976_v29, %v967_v45  ;;  %v1016_v20 = vmul.f32 %v1015_v17, %v1010_v18 }
0x1cd2   : > { %v987_v12 = vadd.f32 %v986_v5, %v977_v57 }
0x1cd4   : > { %v997_v3 = vadd.f32 %v996_v6, %v987_v12 }
0x1cd6   : > { %v1007_v19 = vadd.f32 %v1006_v32, %v997_v3 }
0x1cd8   : > { %v1017_v21 = vadd.f32 %v1016_v20, %v1007_v19 }
0x1cda   : > { %v1018_v51 = vsel %vm612_vm4, %v1017_v21, -inf }
0x1cdb   : > { %1019 = vmax.xlane.f32.xlu0 %v1018_v51 }
0x1d68   : > { %v1020_v22 = vpop.xlane.xlu0 %1019 }
0x1d69   : > { %v1021_v24 = vsub.f32 %v1017_v21, %v1020_v22 }
0x1d6b   : > { %v1022_v25 = vmul.f32 1.442695, %v1021_v24 }
0x1d6d   : > { %1331 = vpow2.f32 %v1022_v25 }
0x1d77   : > { %v1332_v7 = vpop.eup %1331 }
0x1d78   : > { %v1024_v27 = vsel %vm612_vm4, %v1332_v7, 0.0 }
0x1d79   : > { %1025 = vadd.xlane.f32.xlu1 %v1024_v27 }
0x1e06   : > { %v1026_v26 = vpop.xlane.xlu1 %1025 }
0x1e07   : > { %1333 = vrcp.f32 %v1026_v26 }
0x1e11   : > { %v1334_v28 = vpop.eup %1333 }
0x1e12   : > { %v1028_v30 = vmul.f32 %v1334_v28, %v1332_v7 }
0x1e14   : > { %1029 = vst.msk [vmem:[%s1766_s13] sm:$0xff] %vm612_vm4, %v1028_v30 }
0x1e15 PF: > { %s23_s7 = sadd.s32 1, %s1489_s7   ;;  %s2131_s27 = sld [smem:[#allocation10_spill]] }
0x1e16   : > { %p20_p12 = scmp.ge.s32.totalorder %s23_s7, 6   ;;  %s2132_s28 = sld [smem:[#allocation11_spill]] }
0x1e17   : > { %s2133_s29 = sld [smem:[#allocation12_spill]]  ;;  %s2134_s30 = sld [smem:[#allocation13_spill]] }
0x1e18   : > { %s2135_s21 = smov %s1453_s22  ;;  %s2136_s22 = smov %s1457_s23 }
0x1e19   : > { %s2137_s23 = smov %s1634_s18  ;;  %s2138_s24 = smov %s1465_s25 }
0x1e1a   : > { %s2139_s25 = smov %s1469_s26  ;;  %s2140_s26 = smov %s1637_s19 }
0x1e1b   :  { %22 = sbr.rel (!%p20_p12) target bundleno = 11 (0xb), region = 116 }
0x1e22   :  { %1064 = vsyncpa [#allocation5], 1 }
0x1e23   :  { %1066 = vsyncpa [#allocation5 + $0x1], 1 }
0x1e24   :  { %1067 = vsyncpa [#allocation7], 1 }
0x1e25   :  { %1069 = vsyncpa [#allocation7 + $0x1], 1 }

</bundles_post_ra>
